<compile_context>
chip_gen: v7x
topology: tpu7x:2x2x1
jax: 0.10.0
libtpu: 0.0.40
codegen_flags: <defaults>
</compile_context>

<pallas_src>
import functools
import numpy as np

import jax
import jax.numpy as jnp
from jax.experimental import pallas as pl
from jax.experimental.pallas import tpu as pltpu

LANE = 128


# ----------------------------------------------------------------------------
# Parameter initialization (deterministic, PyTorch-Linear-like fan_in scaling)
# ----------------------------------------------------------------------------
def _init_linear(key, fan_in, fan_out):
    k1, k2 = jax.random.split(key)
    scale = 1.0 / np.sqrt(fan_in)
    w = jax.random.uniform(k1, (fan_in, fan_out), jnp.float32, -scale, scale)
    b = jax.random.uniform(k2, (1, fan_out), jnp.float32, -scale, scale)
    return w, b


def init_params(key, n_node_feat, n_pair_feat, n_graphconv, n_latent_feat):
    params = {"gc": []}
    in_n, in_p = n_node_feat, n_pair_feat
    for h in n_graphconv:
        key, *ks = jax.random.split(key, 7)
        wn, bn = _init_linear(ks[0], in_n, h)      # node self
        wa, _ = _init_linear(ks[1], in_n, h)       # adjacency-aggregated node
        wp, _ = _init_linear(ks[2], in_p, h)       # adjacency-aggregated pair
        wpp, bp = _init_linear(ks[3], in_p, h)     # pair self
        wpn, _ = _init_linear(ks[4], in_n, h)      # node->pair (symmetric i,j)
        params["gc"].append(dict(wn=wn, wa=wa, wp=wp, bn=bn,
                                 wpp=wpp, wpn=wpn, bp=bp))
        in_n, in_p = h, h
    h = n_graphconv[-1]
    key, k1, k2, k3, k4 = jax.random.split(key, 5)
    params["mean"] = (_init_linear(k1, h, h), _init_linear(k2, h, n_latent_feat))
    params["logstd"] = (_init_linear(k3, h, h), _init_linear(k4, h, n_latent_feat))
    return params


# ----------------------------------------------------------------------------
# Fused Pallas kernel: one batch element per grid step, all layers + heads
# ----------------------------------------------------------------------------
def _fused_enc_kernel(node_ref, pair_ref, a_ref, aflat_ref, *rest,
                      n_layers, n_nodes, hp, n_latent):
    *w_refs, out_ref = rest
    f32, bf16 = jnp.float32, jnp.bfloat16
    N, HP, L = n_nodes, hp, n_latent

    a_bf = a_ref[...]                 # (N, N)    bf16 adjacency of this batch
    a_col = aflat_ref[...]            # (N*N, 1)  f32  adjacency, row-major flat

    node = node_ref[...]              # (N,   F_node)  bf16
    pair = pair_ref[...]              # (N*N, F_pair)  bf16

    idx = 0
    for layer in range(n_layers):
        is_last = layer == n_layers - 1
        if not is_last:
            wn_cat, wp_cat, bn, bp = w_refs[idx:idx + 4]
            idx += 4
        else:
            wn_cat, wp_only, bn = w_refs[idx:idx + 3]
            idx += 3

        # Node-side projections: [wn | wa (| wpn)], every segment zero-padded
        # to 128 lanes so the slices below are vreg-tile aligned.
        NW = jnp.dot(node, wn_cat[...], preferred_element_type=f32)
        s_self = NW[:, :HP]
        s_agg = NW[:, HP:2 * HP]

        if not is_last:
            n_proj = NW[:, 2 * HP:3 * HP]
            PW = jnp.dot(pair, wp_cat[...], preferred_element_type=f32)  # [wpp|wp]
            p_self = PW[:, :HP]
            p_msg = PW[:, HP:2 * HP]
        else:
            # Last layer: the pair activations are never consumed downstream,
            # so skip the pair self-transform / pair update entirely.
            p_msg = jnp.dot(pair, wp_only[...], preferred_element_type=f32)

        # agg_node @ wa == A @ (node @ wa): per-batch (N,N) x (N,HP) dot.
        agg_n = jnp.dot(a_bf, s_agg.astype(bf16), preferred_element_type=f32)

        # agg_pair @ wp == row-weighted reduce of (pair @ wp):
        #     agg_p[i] = sum_j A[i, j] * p_msg[i*N + j]
        # lane-broadcast multiply + tile-aligned reshape + sublane reduce
        # (no dense selector matmul, no O(B^2 N^3) operand).
        weighted = p_msg * a_col                                  # (N*N, HP)
        agg_p = jnp.sum(weighted.reshape(N, N, HP), axis=1)       # (N,   HP)

        node_f32 = jnp.maximum(s_self + agg_n + agg_p + bn[...], 0.0)
        node = node_f32.astype(bf16)

        if not is_last:
            # Symmetric pair update (sublane broadcasts, not selector dots):
            #   pair[i, j] = relu(pair@wpp [i,j] + n_proj[i] + n_proj[j] + bp)
            bp_v = bp[...]
            blocks = []
            for i in range(N):                       # static unroll, N small
                blk = (p_self[i * N:(i + 1) * N]     # tile-aligned row block
                       + n_proj[i:i + 1, :]          # row i broadcast over block
                       + n_proj                      # rows j = 0..N-1
                       + bp_v)
                blocks.append(jnp.maximum(blk, 0.0))
            pair = jnp.concatenate(blocks, axis=0).astype(bf16)   # (N*N, HP)

    # Heads: shared first layer [w1_mean | w1_logstd] -> (N, 2*HP), then two
    # lane-aligned (HP, L) dots (no zero-padded block-diagonal weight).
    w1, b1, w2m, b2m, w2s, b2s = w_refs[idx:idx + 6]
    h = jnp.maximum(
        jnp.dot(node, w1[...], preferred_element_type=f32) + b1[...], 0.0)
    h_bf = h.astype(bf16)
    z_mean = jnp.dot(h_bf[:, :HP], w2m[...], preferred_element_type=f32) + b2m[...]
    z_lstd = jnp.dot(h_bf[:, HP:], w2s[...], preferred_element_type=f32) + b2s[...]
    out_ref[:, :L] = z_mean.astype(out_ref.dtype)
    out_ref[:, L:] = z_lstd.astype(out_ref.dtype)


# ----------------------------------------------------------------------------
# Wrapper: layout plumbing, 128-lane padded weight packing, pallas_call
# ----------------------------------------------------------------------------
def graph_conv_enc_forward(params, node_feats, pair_feats, A):
    B, N, Fn = node_feats.shape
    Fp = pair_feats.shape[-1]
    f32, bf16 = jnp.float32, jnp.bfloat16

    hiddens = [p["wn"].shape[1] for p in params["gc"]]
    HP = max(LANE, -(-max(hiddens) // LANE) * LANE)   # hidden width padded to 128 lanes
    L = params["mean"][1][0].shape[1]
    n_layers = len(params["gc"])

    def pad_to(w, rows, cols):
        return jnp.zeros((rows, cols), f32).at[:w.shape[0], :w.shape[1]].set(w)

    # ---- weight packing: per-segment 128-lane padding, bf16 MXU operands ----
    weight_args = []
    in_n, in_p = Fn, Fp
    for li, p in enumerate(params["gc"]):
        is_last = li == n_layers - 1
        if li > 0:
            in_n = in_p = HP           # activations are HP wide (zero padded)
        segs = [pad_to(p["wn"], in_n, HP), pad_to(p["wa"], in_n, HP)]
        if not is_last:
            segs.append(pad_to(p["wpn"], in_n, HP))
        weight_args.append(jnp.concatenate(segs, axis=1).astype(bf16))
        if not is_last:
            weight_args.append(jnp.concatenate(
                [pad_to(p["wpp"], in_p, HP), pad_to(p["wp"], in_p, HP)],
                axis=1).astype(bf16))
            weight_args.append(pad_to(p["bn"], 1, HP))   # biases stay f32
            weight_args.append(pad_to(p["bp"], 1, HP))
        else:
            weight_args.append(pad_to(p["wp"], in_p, HP).astype(bf16))
            weight_args.append(pad_to(p["bn"], 1, HP))

    (w1m, b1m), (w2m, b2m) = params["mean"]
    (w1s, b1s), (w2s, b2s) = params["logstd"]
    weight_args += [
        jnp.concatenate([pad_to(w1m, HP, HP), pad_to(w1s, HP, HP)],
                        axis=1).astype(bf16),                      # (HP, 2HP)
        jnp.concatenate([pad_to(b1m, 1, HP), pad_to(b1s, 1, HP)], axis=1),
        pad_to(w2m, HP, L).astype(bf16), b2m.astype(f32),
        pad_to(w2s, HP, L).astype(bf16), b2s.astype(f32),
    ]

    # ---- per-batch inputs (bf16 operands; adjacency 0/1 is exact in bf16) ---
    node_in = node_feats.astype(bf16)                        # (B, N,   Fn)
    pair_in = pair_feats.reshape(B, N * N, Fp).astype(bf16)  # (B, N*N, Fp)
    a_in = A.astype(bf16)                                    # (B, N, N)
    a_flat = A.reshape(B, N * N, 1).astype(f32)              # (B, N*N, 1)

    def batch_spec(arr):
        shp = arr.shape
        return pl.BlockSpec((None,) + shp[1:],
                            lambda b: (b,) + (0,) * (len(shp) - 1))

    def full_spec(arr):
        shp = arr.shape
        return pl.BlockSpec(shp, lambda b: (0,) * len(shp))

    in_arrays = [node_in, pair_in, a_in, a_flat] + weight_args
    in_specs = ([batch_spec(node_in), batch_spec(pair_in), batch_spec(a_in),
                 batch_spec(a_flat)] + [full_spec(w) for w in weight_args])

    kernel = functools.partial(_fused_enc_kernel, n_layers=n_layers,
                               n_nodes=N, hp=HP, n_latent=L)

    # NOTE: VMEM residency per grid step is tiny (<1 MiB) -> defaults are fine
    # on v5e/v6e/v7x; no vmem_limit_bytes override needed at these sizes.
    out = pl.pallas_call(
        kernel,
        out_shape=jax.ShapeDtypeStruct((B, N, 2 * L), f32),
        grid=(B,),
        in_specs=in_specs,
        out_specs=pl.BlockSpec((None, N, 2 * L), lambda b: (b, 0, 0)),
        compiler_params=pltpu.CompilerParams(
            dimension_semantics=("parallel",)),   # both TCs on v7x
    )(*in_arrays)

    return out[..., :L], out[..., L:]


# ----------------------------------------------------------------------------
# Pure-JAX f32 reference (original op ordering) for a sanity check
# ----------------------------------------------------------------------------
def _ref_forward(params, node, pair, A):
    for p in params["gc"]:
        agg_node = jnp.einsum('bij,bjf->bif', A, node)
        agg_pair = jnp.einsum('bij,bijf->bif', A, pair)
        new_node = jax.nn.relu(node @ p["wn"] + agg_node @ p["wa"]
                               + agg_pair @ p["wp"] + p["bn"])
        n_proj = node @ p["wpn"]
        new_pair = jax.nn.relu(jnp.einsum('bijf,fh->bijh', pair, p["wpp"])
                               + n_proj[:, :, None, :] + n_proj[:, None, :, :]
                               + p["bp"].reshape(1, 1, 1, -1))
        node, pair = new_node, new_pair

    def mlp(x, pp):
        (w1, b1), (w2, b2) = pp
        return jax.nn.relu(x @ w1 + b1) @ w2 + b2

    return mlp(node, params["mean"]), mlp(node, params["logstd"])


# ----------------------------------------------------------------------------
if __name__ == "__main__":
    B, N = 2, 8                       # N multiple of 8 keeps slices tile-aligned
    n_node_feat, n_pair_feat = 23, 15
    n_graphconv = [32, 64, 128]
    n_latent_feat = 128

    key = jax.random.PRNGKey(0)
    k_par, k_node, k_pair, k_adj = jax.random.split(key, 4)

    params = init_params(k_par, n_node_feat, n_pair_feat, n_graphconv,
                         n_latent_feat)

    node_feats = jax.random.normal(k_node, (B, N, n_node_feat), jnp.float32)
    pair_feats = jax.random.normal(k_pair, (B, N, N, n_pair_feat), jnp.float32)
    # Symmetric 0/1 adjacency with self-loops.
    raw = jax.random.uniform(k_adj, (B, N, N))
    A = ((raw + jnp.swapaxes(raw, 1, 2)) * 0.5 > 0.5).astype(jnp.float32)
    A = jnp.maximum(A, jnp.eye(N, dtype=jnp.float32)[None])

    fwd = jax.jit(graph_conv_enc_forward)
    z_mean, z_log_std = fwd(params, node_feats, pair_feats, A)
    jax.block_until_ready((z_mean, z_log_std))

    ref_mean, ref_logstd = _ref_forward(params, node_feats, pair_feats, A)
    # bf16 MXU operands (f32 accumulation) vs. the pure-f32 reference => looser
    # tolerance than the previous all-f32 kernel.
    np.testing.assert_allclose(np.asarray(z_mean), np.asarray(ref_mean),
                               rtol=5e-2, atol=5e-2)
    np.testing.assert_allclose(np.asarray(z_log_std), np.asarray(ref_logstd),
                               rtol=5e-2, atol=5e-2)

    assert z_mean.shape == (B, N, n_latent_feat)
    assert z_log_std.shape == (B, N, n_latent_feat)
    print("KERNEL_OK")
</pallas_src>

<mosaic_0001>
module attributes {stable_mosaic.version = 11 : i64} {
  func.func @_fused_enc_kernel(%arg0: i32, %arg1: memref<1x8x23xbf16, #tpu.memory_space<vmem>>, %arg2: memref<1x64x15xbf16, #tpu.memory_space<vmem>>, %arg3: memref<1x8x8xbf16, #tpu.memory_space<vmem>>, %arg4: memref<1x64x1xf32, #tpu.memory_space<vmem>>, %arg5: memref<23x384xbf16, #tpu.memory_space<vmem>>, %arg6: memref<15x256xbf16, #tpu.memory_space<vmem>>, %arg7: memref<1x128xf32, #tpu.memory_space<vmem>>, %arg8: memref<1x128xf32, #tpu.memory_space<vmem>>, %arg9: memref<128x384xbf16, #tpu.memory_space<vmem>>, %arg10: memref<128x256xbf16, #tpu.memory_space<vmem>>, %arg11: memref<1x128xf32, #tpu.memory_space<vmem>>, %arg12: memref<1x128xf32, #tpu.memory_space<vmem>>, %arg13: memref<128x256xbf16, #tpu.memory_space<vmem>>, %arg14: memref<128x128xbf16, #tpu.memory_space<vmem>>, %arg15: memref<1x128xf32, #tpu.memory_space<vmem>>, %arg16: memref<128x256xbf16, #tpu.memory_space<vmem>>, %arg17: memref<1x256xf32, #tpu.memory_space<vmem>>, %arg18: memref<128x128xbf16, #tpu.memory_space<vmem>>, %arg19: memref<1x128xf32, #tpu.memory_space<vmem>>, %arg20: memref<128x128xbf16, #tpu.memory_space<vmem>>, %arg21: memref<1x128xf32, #tpu.memory_space<vmem>>, %arg22: memref<1x8x256xf32, #tpu.memory_space<vmem>>) attributes {dimension_semantics = [#tpu.dimension_semantics<parallel>], iteration_bounds = array<i64: 2>, scalar_prefetch = 0 : i64, scratch_operands = 0 : i64, tpu.core_type = #tpu.core_type<tc>, window_params = [{transform_indices = @transform_0, window_bounds = array<i64: 1, 8, 23>}, {transform_indices = @transform_1, window_bounds = array<i64: 1, 64, 15>}, {transform_indices = @transform_2, window_bounds = array<i64: 1, 8, 8>}, {transform_indices = @transform_3, window_bounds = array<i64: 1, 64, 1>}, {pipeline_mode = #tpu.pipeline_mode<synchronous>, transform_indices = @transform_4, window_bounds = array<i64: 23, 384>}, {pipeline_mode = #tpu.pipeline_mode<synchronous>, transform_indices = @transform_5, window_bounds = array<i64: 15, 256>}, {pipeline_mode = #tpu.pipeline_mode<synchronous>, transform_indices = @transform_6, window_bounds = array<i64: 1, 128>}, {pipeline_mode = #tpu.pipeline_mode<synchronous>, transform_indices = @transform_7, window_bounds = array<i64: 1, 128>}, {pipeline_mode = #tpu.pipeline_mode<synchronous>, transform_indices = @transform_8, window_bounds = array<i64: 128, 384>}, {pipeline_mode = #tpu.pipeline_mode<synchronous>, transform_indices = @transform_9, window_bounds = array<i64: 128, 256>}, {pipeline_mode = #tpu.pipeline_mode<synchronous>, transform_indices = @transform_10, window_bounds = array<i64: 1, 128>}, {pipeline_mode = #tpu.pipeline_mode<synchronous>, transform_indices = @transform_11, window_bounds = array<i64: 1, 128>}, {pipeline_mode = #tpu.pipeline_mode<synchronous>, transform_indices = @transform_12, window_bounds = array<i64: 128, 256>}, {pipeline_mode = #tpu.pipeline_mode<synchronous>, transform_indices = @transform_13, window_bounds = array<i64: 128, 128>}, {pipeline_mode = #tpu.pipeline_mode<synchronous>, transform_indices = @transform_14, window_bounds = array<i64: 1, 128>}, {pipeline_mode = #tpu.pipeline_mode<synchronous>, transform_indices = @transform_15, window_bounds = array<i64: 128, 256>}, {pipeline_mode = #tpu.pipeline_mode<synchronous>, transform_indices = @transform_16, window_bounds = array<i64: 1, 256>}, {pipeline_mode = #tpu.pipeline_mode<synchronous>, transform_indices = @transform_17, window_bounds = array<i64: 128, 128>}, {pipeline_mode = #tpu.pipeline_mode<synchronous>, transform_indices = @transform_18, window_bounds = array<i64: 1, 128>}, {pipeline_mode = #tpu.pipeline_mode<synchronous>, transform_indices = @transform_19, window_bounds = array<i64: 128, 128>}, {pipeline_mode = #tpu.pipeline_mode<synchronous>, transform_indices = @transform_20, window_bounds = array<i64: 1, 128>}, {transform_indices = @transform_21, window_bounds = array<i64: 1, 8, 256>}]} {
    %c0 = arith.constant 0 : index
    %c0_0 = arith.constant 0 : index
    %c0_1 = arith.constant 0 : index
    %0 = vector.load %arg3[%c0, %c0_0, %c0_1] : memref<1x8x8xbf16, #tpu.memory_space<vmem>>, vector<1x8x8xbf16>
    %1 = vector.shape_cast %0 : vector<1x8x8xbf16> to vector<8x8xbf16>
    %c0_2 = arith.constant 0 : index
    %c0_3 = arith.constant 0 : index
    %c0_4 = arith.constant 0 : index
    %2 = vector.load %arg4[%c0_2, %c0_3, %c0_4] : memref<1x64x1xf32, #tpu.memory_space<vmem>>, vector<1x64x1xf32>
    %3 = vector.shape_cast %2 : vector<1x64x1xf32> to vector<64x1xf32>
    %c0_5 = arith.constant 0 : index
    %c0_6 = arith.constant 0 : index
    %c0_7 = arith.constant 0 : index
    %4 = vector.load %arg1[%c0_5, %c0_6, %c0_7] : memref<1x8x23xbf16, #tpu.memory_space<vmem>>, vector<1x8x23xbf16>
    %5 = vector.shape_cast %4 : vector<1x8x23xbf16> to vector<8x23xbf16>
    %c0_8 = arith.constant 0 : index
    %c0_9 = arith.constant 0 : index
    %c0_10 = arith.constant 0 : index
    %6 = vector.load %arg2[%c0_8, %c0_9, %c0_10] : memref<1x64x15xbf16, #tpu.memory_space<vmem>>, vector<1x64x15xbf16>
    %7 = vector.shape_cast %6 : vector<1x64x15xbf16> to vector<64x15xbf16>
    %c0_11 = arith.constant 0 : index
    %c0_12 = arith.constant 0 : index
    %8 = vector.load %arg5[%c0_11, %c0_12] : memref<23x384xbf16, #tpu.memory_space<vmem>>, vector<23x384xbf16>
    %cst = arith.constant dense<0.000000e+00> : vector<8x384xf32>
    %9 = tpu.matmul %5, %8, %cst {dimension_numbers = #tpu.dot_dimension_numbers<[1], [0], [0], [1], [0, 0, 1, 1], [], []>} : vector<8x23xbf16>, vector<23x384xbf16>, vector<8x384xf32> -> vector<8x384xf32>
    %10 = vector.extract_strided_slice %9 {offsets = [0, 0], sizes = [8, 128], strides = [1, 1]} : vector<8x384xf32> to vector<8x128xf32>
    %11 = vector.extract_strided_slice %9 {offsets = [0, 128], sizes = [8, 128], strides = [1, 1]} : vector<8x384xf32> to vector<8x128xf32>
    %12 = vector.extract_strided_slice %9 {offsets = [0, 256], sizes = [8, 128], strides = [1, 1]} : vector<8x384xf32> to vector<8x128xf32>
    %c0_13 = arith.constant 0 : index
    %c0_14 = arith.constant 0 : index
    %13 = vector.load %arg6[%c0_13, %c0_14] : memref<15x256xbf16, #tpu.memory_space<vmem>>, vector<15x256xbf16>
    %cst_15 = arith.constant dense<0.000000e+00> : vector<64x256xf32>
    %14 = tpu.matmul %7, %13, %cst_15 {dimension_numbers = #tpu.dot_dimension_numbers<[1], [0], [0], [1], [0, 0, 1, 1], [], []>} : vector<64x15xbf16>, vector<15x256xbf16>, vector<64x256xf32> -> vector<64x256xf32>
    %15 = vector.extract_strided_slice %14 {offsets = [0, 0], sizes = [64, 128], strides = [1, 1]} : vector<64x256xf32> to vector<64x128xf32>
    %16 = vector.extract_strided_slice %14 {offsets = [0, 128], sizes = [64, 128], strides = [1, 1]} : vector<64x256xf32> to vector<64x128xf32>
    %17 = arith.truncf %11 : vector<8x128xf32> to vector<8x128xbf16>
    %cst_16 = arith.constant dense<0.000000e+00> : vector<8x128xf32>
    %18 = tpu.matmul %1, %17, %cst_16 {dimension_numbers = #tpu.dot_dimension_numbers<[1], [0], [0], [1], [0, 0, 1, 1], [], []>} : vector<8x8xbf16>, vector<8x128xbf16>, vector<8x128xf32> -> vector<8x128xf32>
    %19 = vector.broadcast %3 : vector<64x1xf32> to vector<64x128xf32>
    %20 = arith.mulf %16, %19 : vector<64x128xf32>
    %21 = vector.shape_cast %20 : vector<64x128xf32> to vector<8x8x128xf32>
    %cst_17 = arith.constant dense<0.000000e+00> : vector<8x128xf32>
    %22 = vector.multi_reduction <add>, %21, %cst_17 [1] : vector<8x8x128xf32> to vector<8x128xf32>
    %23 = arith.addf %10, %18 : vector<8x128xf32>
    %24 = arith.addf %23, %22 : vector<8x128xf32>
    %c0_18 = arith.constant 0 : index
    %c0_19 = arith.constant 0 : index
    %25 = vector.load %arg7[%c0_18, %c0_19] : memref<1x128xf32, #tpu.memory_space<vmem>>, vector<1x128xf32>
    %26 = vector.broadcast %25 : vector<1x128xf32> to vector<8x128xf32>
    %27 = arith.addf %24, %26 : vector<8x128xf32>
    %cst_20 = arith.constant 0.000000e+00 : f32
    %28 = vector.broadcast %cst_20 : f32 to vector<8x128xf32>
    %29 = arith.maximumf %27, %28 : vector<8x128xf32>
    %30 = arith.truncf %29 : vector<8x128xf32> to vector<8x128xbf16>
    %c0_21 = arith.constant 0 : index
    %c0_22 = arith.constant 0 : index
    %31 = vector.load %arg8[%c0_21, %c0_22] : memref<1x128xf32, #tpu.memory_space<vmem>>, vector<1x128xf32>
    %32 = vector.extract_strided_slice %15 {offsets = [0, 0], sizes = [8, 128], strides = [1, 1]} : vector<64x128xf32> to vector<8x128xf32>
    %33 = vector.extract_strided_slice %12 {offsets = [0, 0], sizes = [1, 128], strides = [1, 1]} : vector<8x128xf32> to vector<1x128xf32>
    %34 = vector.broadcast %33 : vector<1x128xf32> to vector<8x128xf32>
    %35 = arith.addf %32, %34 : vector<8x128xf32>
    %36 = arith.addf %35, %12 : vector<8x128xf32>
    %37 = vector.broadcast %31 : vector<1x128xf32> to vector<8x128xf32>
    %38 = arith.addf %36, %37 : vector<8x128xf32>
    %cst_23 = arith.constant 0.000000e+00 : f32
    %39 = vector.broadcast %cst_23 : f32 to vector<8x128xf32>
    %40 = arith.maximumf %38, %39 : vector<8x128xf32>
    %41 = vector.extract_strided_slice %15 {offsets = [8, 0], sizes = [8, 128], strides = [1, 1]} : vector<64x128xf32> to vector<8x128xf32>
    %42 = vector.extract_strided_slice %12 {offsets = [1, 0], sizes = [1, 128], strides = [1, 1]} : vector<8x128xf32> to vector<1x128xf32>
    %43 = vector.broadcast %42 : vector<1x128xf32> to vector<8x128xf32>
    %44 = arith.addf %41, %43 : vector<8x128xf32>
    %45 = arith.addf %44, %12 : vector<8x128xf32>
    %46 = vector.broadcast %31 : vector<1x128xf32> to vector<8x128xf32>
    %47 = arith.addf %45, %46 : vector<8x128xf32>
    %cst_24 = arith.constant 0.000000e+00 : f32
    %48 = vector.broadcast %cst_24 : f32 to vector<8x128xf32>
    %49 = arith.maximumf %47, %48 : vector<8x128xf32>
    %50 = vector.extract_strided_slice %15 {offsets = [16, 0], sizes = [8, 128], strides = [1, 1]} : vector<64x128xf32> to vector<8x128xf32>
    %51 = vector.extract_strided_slice %12 {offsets = [2, 0], sizes = [1, 128], strides = [1, 1]} : vector<8x128xf32> to vector<1x128xf32>
    %52 = vector.broadcast %51 : vector<1x128xf32> to vector<8x128xf32>
    %53 = arith.addf %50, %52 : vector<8x128xf32>
    %54 = arith.addf %53, %12 : vector<8x128xf32>
    %55 = vector.broadcast %31 : vector<1x128xf32> to vector<8x128xf32>
    %56 = arith.addf %54, %55 : vector<8x128xf32>
    %cst_25 = arith.constant 0.000000e+00 : f32
    %57 = vector.broadcast %cst_25 : f32 to vector<8x128xf32>
    %58 = arith.maximumf %56, %57 : vector<8x128xf32>
    %59 = vector.extract_strided_slice %15 {offsets = [24, 0], sizes = [8, 128], strides = [1, 1]} : vector<64x128xf32> to vector<8x128xf32>
    %60 = vector.extract_strided_slice %12 {offsets = [3, 0], sizes = [1, 128], strides = [1, 1]} : vector<8x128xf32> to vector<1x128xf32>
    %61 = vector.broadcast %60 : vector<1x128xf32> to vector<8x128xf32>
    %62 = arith.addf %59, %61 : vector<8x128xf32>
    %63 = arith.addf %62, %12 : vector<8x128xf32>
    %64 = vector.broadcast %31 : vector<1x128xf32> to vector<8x128xf32>
    %65 = arith.addf %63, %64 : vector<8x128xf32>
    %cst_26 = arith.constant 0.000000e+00 : f32
    %66 = vector.broadcast %cst_26 : f32 to vector<8x128xf32>
    %67 = arith.maximumf %65, %66 : vector<8x128xf32>
    %68 = vector.extract_strided_slice %15 {offsets = [32, 0], sizes = [8, 128], strides = [1, 1]} : vector<64x128xf32> to vector<8x128xf32>
    %69 = vector.extract_strided_slice %12 {offsets = [4, 0], sizes = [1, 128], strides = [1, 1]} : vector<8x128xf32> to vector<1x128xf32>
    %70 = vector.broadcast %69 : vector<1x128xf32> to vector<8x128xf32>
    %71 = arith.addf %68, %70 : vector<8x128xf32>
    %72 = arith.addf %71, %12 : vector<8x128xf32>
    %73 = vector.broadcast %31 : vector<1x128xf32> to vector<8x128xf32>
    %74 = arith.addf %72, %73 : vector<8x128xf32>
    %cst_27 = arith.constant 0.000000e+00 : f32
    %75 = vector.broadcast %cst_27 : f32 to vector<8x128xf32>
    %76 = arith.maximumf %74, %75 : vector<8x128xf32>
    %77 = vector.extract_strided_slice %15 {offsets = [40, 0], sizes = [8, 128], strides = [1, 1]} : vector<64x128xf32> to vector<8x128xf32>
    %78 = vector.extract_strided_slice %12 {offsets = [5, 0], sizes = [1, 128], strides = [1, 1]} : vector<8x128xf32> to vector<1x128xf32>
    %79 = vector.broadcast %78 : vector<1x128xf32> to vector<8x128xf32>
    %80 = arith.addf %77, %79 : vector<8x128xf32>
    %81 = arith.addf %80, %12 : vector<8x128xf32>
    %82 = vector.broadcast %31 : vector<1x128xf32> to vector<8x128xf32>
    %83 = arith.addf %81, %82 : vector<8x128xf32>
    %cst_28 = arith.constant 0.000000e+00 : f32
    %84 = vector.broadcast %cst_28 : f32 to vector<8x128xf32>
    %85 = arith.maximumf %83, %84 : vector<8x128xf32>
    %86 = vector.extract_strided_slice %15 {offsets = [48, 0], sizes = [8, 128], strides = [1, 1]} : vector<64x128xf32> to vector<8x128xf32>
    %87 = vector.extract_strided_slice %12 {offsets = [6, 0], sizes = [1, 128], strides = [1, 1]} : vector<8x128xf32> to vector<1x128xf32>
    %88 = vector.broadcast %87 : vector<1x128xf32> to vector<8x128xf32>
    %89 = arith.addf %86, %88 : vector<8x128xf32>
    %90 = arith.addf %89, %12 : vector<8x128xf32>
    %91 = vector.broadcast %31 : vector<1x128xf32> to vector<8x128xf32>
    %92 = arith.addf %90, %91 : vector<8x128xf32>
    %cst_29 = arith.constant 0.000000e+00 : f32
    %93 = vector.broadcast %cst_29 : f32 to vector<8x128xf32>
    %94 = arith.maximumf %92, %93 : vector<8x128xf32>
    %95 = vector.extract_strided_slice %15 {offsets = [56, 0], sizes = [8, 128], strides = [1, 1]} : vector<64x128xf32> to vector<8x128xf32>
    %96 = vector.extract_strided_slice %12 {offsets = [7, 0], sizes = [1, 128], strides = [1, 1]} : vector<8x128xf32> to vector<1x128xf32>
    %97 = vector.broadcast %96 : vector<1x128xf32> to vector<8x128xf32>
    %98 = arith.addf %95, %97 : vector<8x128xf32>
    %99 = arith.addf %98, %12 : vector<8x128xf32>
    %100 = vector.broadcast %31 : vector<1x128xf32> to vector<8x128xf32>
    %101 = arith.addf %99, %100 : vector<8x128xf32>
    %cst_30 = arith.constant 0.000000e+00 : f32
    %102 = vector.broadcast %cst_30 : f32 to vector<8x128xf32>
    %103 = arith.maximumf %101, %102 : vector<8x128xf32>
    %104 = tpu.concatenate %40, %49, %58, %67, %76, %85, %94, %103 in 0 : vector<8x128xf32>, vector<8x128xf32>, vector<8x128xf32>, vector<8x128xf32>, vector<8x128xf32>, vector<8x128xf32>, vector<8x128xf32>, vector<8x128xf32> -> vector<64x128xf32>
    %105 = arith.truncf %104 : vector<64x128xf32> to vector<64x128xbf16>
    %c0_31 = arith.constant 0 : index
    %c0_32 = arith.constant 0 : index
    %106 = vector.load %arg9[%c0_31, %c0_32] : memref<128x384xbf16, #tpu.memory_space<vmem>>, vector<128x384xbf16>
    %cst_33 = arith.constant dense<0.000000e+00> : vector<8x384xf32>
    %107 = tpu.matmul %30, %106, %cst_33 {dimension_numbers = #tpu.dot_dimension_numbers<[1], [0], [0], [1], [0, 0, 1, 1], [], []>} : vector<8x128xbf16>, vector<128x384xbf16>, vector<8x384xf32> -> vector<8x384xf32>
    %108 = vector.extract_strided_slice %107 {offsets = [0, 0], sizes = [8, 128], strides = [1, 1]} : vector<8x384xf32> to vector<8x128xf32>
    %109 = vector.extract_strided_slice %107 {offsets = [0, 128], sizes = [8, 128], strides = [1, 1]} : vector<8x384xf32> to vector<8x128xf32>
    %110 = vector.extract_strided_slice %107 {offsets = [0, 256], sizes = [8, 128], strides = [1, 1]} : vector<8x384xf32> to vector<8x128xf32>
    %c0_34 = arith.constant 0 : index
    %c0_35 = arith.constant 0 : index
    %111 = vector.load %arg10[%c0_34, %c0_35] : memref<128x256xbf16, #tpu.memory_space<vmem>>, vector<128x256xbf16>
    %cst_36 = arith.constant dense<0.000000e+00> : vector<64x256xf32>
    %112 = tpu.matmul %105, %111, %cst_36 {dimension_numbers = #tpu.dot_dimension_numbers<[1], [0], [0], [1], [0, 0, 1, 1], [], []>} : vector<64x128xbf16>, vector<128x256xbf16>, vector<64x256xf32> -> vector<64x256xf32>
    %113 = vector.extract_strided_slice %112 {offsets = [0, 0], sizes = [64, 128], strides = [1, 1]} : vector<64x256xf32> to vector<64x128xf32>
    %114 = vector.extract_strided_slice %112 {offsets = [0, 128], sizes = [64, 128], strides = [1, 1]} : vector<64x256xf32> to vector<64x128xf32>
    %115 = arith.truncf %109 : vector<8x128xf32> to vector<8x128xbf16>
    %cst_37 = arith.constant dense<0.000000e+00> : vector<8x128xf32>
    %116 = tpu.matmul %1, %115, %cst_37 {dimension_numbers = #tpu.dot_dimension_numbers<[1], [0], [0], [1], [0, 0, 1, 1], [], []>} : vector<8x8xbf16>, vector<8x128xbf16>, vector<8x128xf32> -> vector<8x128xf32>
    %117 = vector.broadcast %3 : vector<64x1xf32> to vector<64x128xf32>
    %118 = arith.mulf %114, %117 : vector<64x128xf32>
    %119 = vector.shape_cast %118 : vector<64x128xf32> to vector<8x8x128xf32>
    %cst_38 = arith.constant dense<0.000000e+00> : vector<8x128xf32>
    %120 = vector.multi_reduction <add>, %119, %cst_38 [1] : vector<8x8x128xf32> to vector<8x128xf32>
    %121 = arith.addf %108, %116 : vector<8x128xf32>
    %122 = arith.addf %121, %120 : vector<8x128xf32>
    %c0_39 = arith.constant 0 : index
    %c0_40 = arith.constant 0 : index
    %123 = vector.load %arg11[%c0_39, %c0_40] : memref<1x128xf32, #tpu.memory_space<vmem>>, vector<1x128xf32>
    %124 = vector.broadcast %123 : vector<1x128xf32> to vector<8x128xf32>
    %125 = arith.addf %122, %124 : vector<8x128xf32>
    %cst_41 = arith.constant 0.000000e+00 : f32
    %126 = vector.broadcast %cst_41 : f32 to vector<8x128xf32>
    %127 = arith.maximumf %125, %126 : vector<8x128xf32>
    %128 = arith.truncf %127 : vector<8x128xf32> to vector<8x128xbf16>
    %c0_42 = arith.constant 0 : index
    %c0_43 = arith.constant 0 : index
    %129 = vector.load %arg12[%c0_42, %c0_43] : memref<1x128xf32, #tpu.memory_space<vmem>>, vector<1x128xf32>
    %130 = vector.extract_strided_slice %113 {offsets = [0, 0], sizes = [8, 128], strides = [1, 1]} : vector<64x128xf32> to vector<8x128xf32>
    %131 = vector.extract_strided_slice %110 {offsets = [0, 0], sizes = [1, 128], strides = [1, 1]} : vector<8x128xf32> to vector<1x128xf32>
    %132 = vector.broadcast %131 : vector<1x128xf32> to vector<8x128xf32>
    %133 = arith.addf %130, %132 : vector<8x128xf32>
    %134 = arith.addf %133, %110 : vector<8x128xf32>
    %135 = vector.broadcast %129 : vector<1x128xf32> to vector<8x128xf32>
    %136 = arith.addf %134, %135 : vector<8x128xf32>
    %cst_44 = arith.constant 0.000000e+00 : f32
    %137 = vector.broadcast %cst_44 : f32 to vector<8x128xf32>
    %138 = arith.maximumf %136, %137 : vector<8x128xf32>
    %139 = vector.extract_strided_slice %113 {offsets = [8, 0], sizes = [8, 128], strides = [1, 1]} : vector<64x128xf32> to vector<8x128xf32>
    %140 = vector.extract_strided_slice %110 {offsets = [1, 0], sizes = [1, 128], strides = [1, 1]} : vector<8x128xf32> to vector<1x128xf32>
    %141 = vector.broadcast %140 : vector<1x128xf32> to vector<8x128xf32>
    %142 = arith.addf %139, %141 : vector<8x128xf32>
    %143 = arith.addf %142, %110 : vector<8x128xf32>
    %144 = vector.broadcast %129 : vector<1x128xf32> to vector<8x128xf32>
    %145 = arith.addf %143, %144 : vector<8x128xf32>
    %cst_45 = arith.constant 0.000000e+00 : f32
    %146 = vector.broadcast %cst_45 : f32 to vector<8x128xf32>
    %147 = arith.maximumf %145, %146 : vector<8x128xf32>
    %148 = vector.extract_strided_slice %113 {offsets = [16, 0], sizes = [8, 128], strides = [1, 1]} : vector<64x128xf32> to vector<8x128xf32>
    %149 = vector.extract_strided_slice %110 {offsets = [2, 0], sizes = [1, 128], strides = [1, 1]} : vector<8x128xf32> to vector<1x128xf32>
    %150 = vector.broadcast %149 : vector<1x128xf32> to vector<8x128xf32>
    %151 = arith.addf %148, %150 : vector<8x128xf32>
    %152 = arith.addf %151, %110 : vector<8x128xf32>
    %153 = vector.broadcast %129 : vector<1x128xf32> to vector<8x128xf32>
    %154 = arith.addf %152, %153 : vector<8x128xf32>
    %cst_46 = arith.constant 0.000000e+00 : f32
    %155 = vector.broadcast %cst_46 : f32 to vector<8x128xf32>
    %156 = arith.maximumf %154, %155 : vector<8x128xf32>
    %157 = vector.extract_strided_slice %113 {offsets = [24, 0], sizes = [8, 128], strides = [1, 1]} : vector<64x128xf32> to vector<8x128xf32>
    %158 = vector.extract_strided_slice %110 {offsets = [3, 0], sizes = [1, 128], strides = [1, 1]} : vector<8x128xf32> to vector<1x128xf32>
    %159 = vector.broadcast %158 : vector<1x128xf32> to vector<8x128xf32>
    %160 = arith.addf %157, %159 : vector<8x128xf32>
    %161 = arith.addf %160, %110 : vector<8x128xf32>
    %162 = vector.broadcast %129 : vector<1x128xf32> to vector<8x128xf32>
    %163 = arith.addf %161, %162 : vector<8x128xf32>
    %cst_47 = arith.constant 0.000000e+00 : f32
    %164 = vector.broadcast %cst_47 : f32 to vector<8x128xf32>
    %165 = arith.maximumf %163, %164 : vector<8x128xf32>
    %166 = vector.extract_strided_slice %113 {offsets = [32, 0], sizes = [8, 128], strides = [1, 1]} : vector<64x128xf32> to vector<8x128xf32>
    %167 = vector.extract_strided_slice %110 {offsets = [4, 0], sizes = [1, 128], strides = [1, 1]} : vector<8x128xf32> to vector<1x128xf32>
    %168 = vector.broadcast %167 : vector<1x128xf32> to vector<8x128xf32>
    %169 = arith.addf %166, %168 : vector<8x128xf32>
    %170 = arith.addf %169, %110 : vector<8x128xf32>
    %171 = vector.broadcast %129 : vector<1x128xf32> to vector<8x128xf32>
    %172 = arith.addf %170, %171 : vector<8x128xf32>
    %cst_48 = arith.constant 0.000000e+00 : f32
    %173 = vector.broadcast %cst_48 : f32 to vector<8x128xf32>
    %174 = arith.maximumf %172, %173 : vector<8x128xf32>
    %175 = vector.extract_strided_slice %113 {offsets = [40, 0], sizes = [8, 128], strides = [1, 1]} : vector<64x128xf32> to vector<8x128xf32>
    %176 = vector.extract_strided_slice %110 {offsets = [5, 0], sizes = [1, 128], strides = [1, 1]} : vector<8x128xf32> to vector<1x128xf32>
    %177 = vector.broadcast %176 : vector<1x128xf32> to vector<8x128xf32>
    %178 = arith.addf %175, %177 : vector<8x128xf32>
    %179 = arith.addf %178, %110 : vector<8x128xf32>
    %180 = vector.broadcast %129 : vector<1x128xf32> to vector<8x128xf32>
    %181 = arith.addf %179, %180 : vector<8x128xf32>
    %cst_49 = arith.constant 0.000000e+00 : f32
    %182 = vector.broadcast %cst_49 : f32 to vector<8x128xf32>
    %183 = arith.maximumf %181, %182 : vector<8x128xf32>
    %184 = vector.extract_strided_slice %113 {offsets = [48, 0], sizes = [8, 128], strides = [1, 1]} : vector<64x128xf32> to vector<8x128xf32>
    %185 = vector.extract_strided_slice %110 {offsets = [6, 0], sizes = [1, 128], strides = [1, 1]} : vector<8x128xf32> to vector<1x128xf32>
    %186 = vector.broadcast %185 : vector<1x128xf32> to vector<8x128xf32>
    %187 = arith.addf %184, %186 : vector<8x128xf32>
    %188 = arith.addf %187, %110 : vector<8x128xf32>
    %189 = vector.broadcast %129 : vector<1x128xf32> to vector<8x128xf32>
    %190 = arith.addf %188, %189 : vector<8x128xf32>
    %cst_50 = arith.constant 0.000000e+00 : f32
    %191 = vector.broadcast %cst_50 : f32 to vector<8x128xf32>
    %192 = arith.maximumf %190, %191 : vector<8x128xf32>
    %193 = vector.extract_strided_slice %113 {offsets = [56, 0], sizes = [8, 128], strides = [1, 1]} : vector<64x128xf32> to vector<8x128xf32>
    %194 = vector.extract_strided_slice %110 {offsets = [7, 0], sizes = [1, 128], strides = [1, 1]} : vector<8x128xf32> to vector<1x128xf32>
    %195 = vector.broadcast %194 : vector<1x128xf32> to vector<8x128xf32>
    %196 = arith.addf %193, %195 : vector<8x128xf32>
    %197 = arith.addf %196, %110 : vector<8x128xf32>
    %198 = vector.broadcast %129 : vector<1x128xf32> to vector<8x128xf32>
    %199 = arith.addf %197, %198 : vector<8x128xf32>
    %cst_51 = arith.constant 0.000000e+00 : f32
    %200 = vector.broadcast %cst_51 : f32 to vector<8x128xf32>
    %201 = arith.maximumf %199, %200 : vector<8x128xf32>
    %202 = tpu.concatenate %138, %147, %156, %165, %174, %183, %192, %201 in 0 : vector<8x128xf32>, vector<8x128xf32>, vector<8x128xf32>, vector<8x128xf32>, vector<8x128xf32>, vector<8x128xf32>, vector<8x128xf32>, vector<8x128xf32> -> vector<64x128xf32>
    %203 = arith.truncf %202 : vector<64x128xf32> to vector<64x128xbf16>
    %c0_52 = arith.constant 0 : index
    %c0_53 = arith.constant 0 : index
    %204 = vector.load %arg13[%c0_52, %c0_53] : memref<128x256xbf16, #tpu.memory_space<vmem>>, vector<128x256xbf16>
    %cst_54 = arith.constant dense<0.000000e+00> : vector<8x256xf32>
    %205 = tpu.matmul %128, %204, %cst_54 {dimension_numbers = #tpu.dot_dimension_numbers<[1], [0], [0], [1], [0, 0, 1, 1], [], []>} : vector<8x128xbf16>, vector<128x256xbf16>, vector<8x256xf32> -> vector<8x256xf32>
    %206 = vector.extract_strided_slice %205 {offsets = [0, 0], sizes = [8, 128], strides = [1, 1]} : vector<8x256xf32> to vector<8x128xf32>
    %207 = vector.extract_strided_slice %205 {offsets = [0, 128], sizes = [8, 128], strides = [1, 1]} : vector<8x256xf32> to vector<8x128xf32>
    %c0_55 = arith.constant 0 : index
    %c0_56 = arith.constant 0 : index
    %208 = vector.load %arg14[%c0_55, %c0_56] : memref<128x128xbf16, #tpu.memory_space<vmem>>, vector<128x128xbf16>
    %cst_57 = arith.constant dense<0.000000e+00> : vector<64x128xf32>
    %209 = tpu.matmul %203, %208, %cst_57 {dimension_numbers = #tpu.dot_dimension_numbers<[1], [0], [0], [1], [0, 0, 1, 1], [], []>} : vector<64x128xbf16>, vector<128x128xbf16>, vector<64x128xf32> -> vector<64x128xf32>
    %210 = arith.truncf %207 : vector<8x128xf32> to vector<8x128xbf16>
    %cst_58 = arith.constant dense<0.000000e+00> : vector<8x128xf32>
    %211 = tpu.matmul %1, %210, %cst_58 {dimension_numbers = #tpu.dot_dimension_numbers<[1], [0], [0], [1], [0, 0, 1, 1], [], []>} : vector<8x8xbf16>, vector<8x128xbf16>, vector<8x128xf32> -> vector<8x128xf32>
    %212 = vector.broadcast %3 : vector<64x1xf32> to vector<64x128xf32>
    %213 = arith.mulf %209, %212 : vector<64x128xf32>
    %214 = vector.shape_cast %213 : vector<64x128xf32> to vector<8x8x128xf32>
    %cst_59 = arith.constant dense<0.000000e+00> : vector<8x128xf32>
    %215 = vector.multi_reduction <add>, %214, %cst_59 [1] : vector<8x8x128xf32> to vector<8x128xf32>
    %216 = arith.addf %206, %211 : vector<8x128xf32>
    %217 = arith.addf %216, %215 : vector<8x128xf32>
    %c0_60 = arith.constant 0 : index
    %c0_61 = arith.constant 0 : index
    %218 = vector.load %arg15[%c0_60, %c0_61] : memref<1x128xf32, #tpu.memory_space<vmem>>, vector<1x128xf32>
    %219 = vector.broadcast %218 : vector<1x128xf32> to vector<8x128xf32>
    %220 = arith.addf %217, %219 : vector<8x128xf32>
    %cst_62 = arith.constant 0.000000e+00 : f32
    %221 = vector.broadcast %cst_62 : f32 to vector<8x128xf32>
    %222 = arith.maximumf %220, %221 : vector<8x128xf32>
    %223 = arith.truncf %222 : vector<8x128xf32> to vector<8x128xbf16>
    %c0_63 = arith.constant 0 : index
    %c0_64 = arith.constant 0 : index
    %224 = vector.load %arg16[%c0_63, %c0_64] : memref<128x256xbf16, #tpu.memory_space<vmem>>, vector<128x256xbf16>
    %cst_65 = arith.constant dense<0.000000e+00> : vector<8x256xf32>
    %225 = tpu.matmul %223, %224, %cst_65 {dimension_numbers = #tpu.dot_dimension_numbers<[1], [0], [0], [1], [0, 0, 1, 1], [], []>} : vector<8x128xbf16>, vector<128x256xbf16>, vector<8x256xf32> -> vector<8x256xf32>
    %c0_66 = arith.constant 0 : index
    %c0_67 = arith.constant 0 : index
    %226 = vector.load %arg17[%c0_66, %c0_67] : memref<1x256xf32, #tpu.memory_space<vmem>>, vector<1x256xf32>
    %227 = vector.broadcast %226 : vector<1x256xf32> to vector<8x256xf32>
    %228 = arith.addf %225, %227 : vector<8x256xf32>
    %cst_68 = arith.constant 0.000000e+00 : f32
    %229 = vector.broadcast %cst_68 : f32 to vector<8x256xf32>
    %230 = arith.maximumf %228, %229 : vector<8x256xf32>
    %231 = arith.truncf %230 : vector<8x256xf32> to vector<8x256xbf16>
    %232 = vector.extract_strided_slice %231 {offsets = [0, 0], sizes = [8, 128], strides = [1, 1]} : vector<8x256xbf16> to vector<8x128xbf16>
    %c0_69 = arith.constant 0 : index
    %c0_70 = arith.constant 0 : index
    %233 = vector.load %arg18[%c0_69, %c0_70] : memref<128x128xbf16, #tpu.memory_space<vmem>>, vector<128x128xbf16>
    %cst_71 = arith.constant dense<0.000000e+00> : vector<8x128xf32>
    %234 = tpu.matmul %232, %233, %cst_71 {dimension_numbers = #tpu.dot_dimension_numbers<[1], [0], [0], [1], [0, 0, 1, 1], [], []>} : vector<8x128xbf16>, vector<128x128xbf16>, vector<8x128xf32> -> vector<8x128xf32>
    %c0_72 = arith.constant 0 : index
    %c0_73 = arith.constant 0 : index
    %235 = vector.load %arg19[%c0_72, %c0_73] : memref<1x128xf32, #tpu.memory_space<vmem>>, vector<1x128xf32>
    %236 = vector.broadcast %235 : vector<1x128xf32> to vector<8x128xf32>
    %237 = arith.addf %234, %236 : vector<8x128xf32>
    %238 = vector.extract_strided_slice %231 {offsets = [0, 128], sizes = [8, 128], strides = [1, 1]} : vector<8x256xbf16> to vector<8x128xbf16>
    %c0_74 = arith.constant 0 : index
    %c0_75 = arith.constant 0 : index
    %239 = vector.load %arg20[%c0_74, %c0_75] : memref<128x128xbf16, #tpu.memory_space<vmem>>, vector<128x128xbf16>
    %cst_76 = arith.constant dense<0.000000e+00> : vector<8x128xf32>
    %240 = tpu.matmul %238, %239, %cst_76 {dimension_numbers = #tpu.dot_dimension_numbers<[1], [0], [0], [1], [0, 0, 1, 1], [], []>} : vector<8x128xbf16>, vector<128x128xbf16>, vector<8x128xf32> -> vector<8x128xf32>
    %c0_77 = arith.constant 0 : index
    %c0_78 = arith.constant 0 : index
    %241 = vector.load %arg21[%c0_77, %c0_78] : memref<1x128xf32, #tpu.memory_space<vmem>>, vector<1x128xf32>
    %242 = vector.broadcast %241 : vector<1x128xf32> to vector<8x128xf32>
    %243 = arith.addf %240, %242 : vector<8x128xf32>
    %c0_79 = arith.constant 0 : index
    %c0_80 = arith.constant 0 : index
    %c0_81 = arith.constant 0 : index
    %244 = vector.load %arg22[%c0_79, %c0_80, %c0_81] : memref<1x8x256xf32, #tpu.memory_space<vmem>>, vector<1x8x128xf32>
    %245 = vector.shape_cast %244 : vector<1x8x128xf32> to vector<8x128xf32>
    %246 = vector.shape_cast %237 : vector<8x128xf32> to vector<1x8x128xf32>
    tpu.vector_store %arg22[%c0_79, %c0_80, %c0_81], %246 {strides = array<i32>} : memref<1x8x256xf32, #tpu.memory_space<vmem>>, vector<1x8x128xf32>,
    %c0_82 = arith.constant 0 : index
    %c0_83 = arith.constant 0 : index
    %c128 = arith.constant 128 : index
    %247 = vector.load %arg22[%c0_82, %c0_83, %c128] : memref<1x8x256xf32, #tpu.memory_space<vmem>>, vector<1x8x128xf32>
    %248 = vector.shape_cast %247 : vector<1x8x128xf32> to vector<8x128xf32>
    %249 = vector.shape_cast %243 : vector<8x128xf32> to vector<1x8x128xf32>
    tpu.vector_store %arg22[%c0_82, %c0_83, %c128], %249 {strides = array<i32>} : memref<1x8x256xf32, #tpu.memory_space<vmem>>, vector<1x8x128xf32>,
    return
  }
  func.func @transform_0(%arg0: i32) -> (i32, i32, i32) {
    %c0_i32 = arith.constant 0 : i32
    %c0_i32_0 = arith.constant 0 : i32
    %c0_i32_1 = arith.constant 0 : i32
    return %arg0, %c0_i32, %c0_i32_0 : i32, i32, i32
  }
  func.func @transform_1(%arg0: i32) -> (i32, i32, i32) {
    %c0_i32 = arith.constant 0 : i32
    %c0_i32_0 = arith.constant 0 : i32
    %c0_i32_1 = arith.constant 0 : i32
    return %arg0, %c0_i32, %c0_i32_0 : i32, i32, i32
  }
  func.func @transform_2(%arg0: i32) -> (i32, i32, i32) {
    %c0_i32 = arith.constant 0 : i32
    %c0_i32_0 = arith.constant 0 : i32
    %c0_i32_1 = arith.constant 0 : i32
    return %arg0, %c0_i32, %c0_i32_0 : i32, i32, i32
  }
  func.func @transform_3(%arg0: i32) -> (i32, i32, i32) {
    %c0_i32 = arith.constant 0 : i32
    %c0_i32_0 = arith.constant 0 : i32
    %c0_i32_1 = arith.constant 0 : i32
    return %arg0, %c0_i32, %c0_i32_0 : i32, i32, i32
  }
  func.func @transform_4(%arg0: i32) -> (i32, i32) {
    %c0_i32 = arith.constant 0 : i32
    %c0_i32_0 = arith.constant 0 : i32
    %c0_i32_1 = arith.constant 0 : i32
    return %c0_i32, %c0_i32_0 : i32, i32
  }
  func.func @transform_5(%arg0: i32) -> (i32, i32) {
    %c0_i32 = arith.constant 0 : i32
    %c0_i32_0 = arith.constant 0 : i32
    %c0_i32_1 = arith.constant 0 : i32
    return %c0_i32, %c0_i32_0 : i32, i32
  }
  func.func @transform_6(%arg0: i32) -> (i32, i32) {
    %c0_i32 = arith.constant 0 : i32
    %c0_i32_0 = arith.constant 0 : i32
    %c0_i32_1 = arith.constant 0 : i32
    return %c0_i32, %c0_i32_0 : i32, i32
  }
  func.func @transform_7(%arg0: i32) -> (i32, i32) {
    %c0_i32 = arith.constant 0 : i32
    %c0_i32_0 = arith.constant 0 : i32
    %c0_i32_1 = arith.constant 0 : i32
    return %c0_i32, %c0_i32_0 : i32, i32
  }
  func.func @transform_8(%arg0: i32) -> (i32, i32) {
    %c0_i32 = arith.constant 0 : i32
    %c0_i32_0 = arith.constant 0 : i32
    %c0_i32_1 = arith.constant 0 : i32
    return %c0_i32, %c0_i32_0 : i32, i32
  }
  func.func @transform_9(%arg0: i32) -> (i32, i32) {
    %c0_i32 = arith.constant 0 : i32
    %c0_i32_0 = arith.constant 0 : i32
    %c0_i32_1 = arith.constant 0 : i32
    return %c0_i32, %c0_i32_0 : i32, i32
  }
  func.func @transform_10(%arg0: i32) -> (i32, i32) {
    %c0_i32 = arith.constant 0 : i32
    %c0_i32_0 = arith.constant 0 : i32
    %c0_i32_1 = arith.constant 0 : i32
    return %c0_i32, %c0_i32_0 : i32, i32
  }
  func.func @transform_11(%arg0: i32) -> (i32, i32) {
    %c0_i32 = arith.constant 0 : i32
    %c0_i32_0 = arith.constant 0 : i32
    %c0_i32_1 = arith.constant 0 : i32
    return %c0_i32, %c0_i32_0 : i32, i32
  }
  func.func @transform_12(%arg0: i32) -> (i32, i32) {
    %c0_i32 = arith.constant 0 : i32
    %c0_i32_0 = arith.constant 0 : i32
    %c0_i32_1 = arith.constant 0 : i32
    return %c0_i32, %c0_i32_0 : i32, i32
  }
  func.func @transform_13(%arg0: i32) -> (i32, i32) {
    %c0_i32 = arith.constant 0 : i32
    %c0_i32_0 = arith.constant 0 : i32
    %c0_i32_1 = arith.constant 0 : i32
    return %c0_i32, %c0_i32_0 : i32, i32
  }
  func.func @transform_14(%arg0: i32) -> (i32, i32) {
    %c0_i32 = arith.constant 0 : i32
    %c0_i32_0 = arith.constant 0 : i32
    %c0_i32_1 = arith.constant 0 : i32
    return %c0_i32, %c0_i32_0 : i32, i32
  }
  func.func @transform_15(%arg0: i32) -> (i32, i32) {
    %c0_i32 = arith.constant 0 : i32
    %c0_i32_0 = arith.constant 0 : i32
    %c0_i32_1 = arith.constant 0 : i32
    return %c0_i32, %c0_i32_0 : i32, i32
  }
  func.func @transform_16(%arg0: i32) -> (i32, i32) {
    %c0_i32 = arith.constant 0 : i32
    %c0_i32_0 = arith.constant 0 : i32
    %c0_i32_1 = arith.constant 0 : i32
    return %c0_i32, %c0_i32_0 : i32, i32
  }
  func.func @transform_17(%arg0: i32) -> (i32, i32) {
    %c0_i32 = arith.constant 0 : i32
    %c0_i32_0 = arith.constant 0 : i32
    %c0_i32_1 = arith.constant 0 : i32
    return %c0_i32, %c0_i32_0 : i32, i32
  }
  func.func @transform_18(%arg0: i32) -> (i32, i32) {
    %c0_i32 = arith.constant 0 : i32
    %c0_i32_0 = arith.constant 0 : i32
    %c0_i32_1 = arith.constant 0 : i32
    return %c0_i32, %c0_i32_0 : i32, i32
  }
  func.func @transform_19(%arg0: i32) -> (i32, i32) {
    %c0_i32 = arith.constant 0 : i32
    %c0_i32_0 = arith.constant 0 : i32
    %c0_i32_1 = arith.constant 0 : i32
    return %c0_i32, %c0_i32_0 : i32, i32
  }
  func.func @transform_20(%arg0: i32) -> (i32, i32) {
    %c0_i32 = arith.constant 0 : i32
    %c0_i32_0 = arith.constant 0 : i32
    %c0_i32_1 = arith.constant 0 : i32
    return %c0_i32, %c0_i32_0 : i32, i32
  }
  func.func @transform_21(%arg0: i32) -> (i32, i32, i32) {
    %c0_i32 = arith.constant 0 : i32
    %c0_i32_0 = arith.constant 0 : i32
    %c0_i32_1 = arith.constant 0 : i32
    return %arg0, %c0_i32, %c0_i32_0 : i32, i32, i32
  }
}

</mosaic_0001>

<bundles_post_ra>
// kernel: graph_conv_enc_forward.1
= control target key start
LH: loop header
LB: loop body
LE: loop exit
PB: predicated region body
PF: predicated region fallthrough
CT: control target
= control target key end

     0   :  { %s3926_s0 = inlined_call_operand.vmem [shape: bf16[2,8,23], index: 0, kind: input, shape index: {}]   ;;  %s3927_s1 = inlined_call_operand.vmem [shape: bf16[2,64,15], index: 1, kind: input, shape index: {}]   ;;  %s3928_s2 = inlined_call_operand.vmem [shape: bf16[2,8,8], index: 2, kind: input, shape index: {}]   ;;  %s3929_s3 = inlined_call_operand.vmem [shape: f32[2,64,1], index: 3, kind: input, shape index: {}]   ;;  %s3930_s4 = inlined_call_operand.vmem [shape: bf16[23,384], index: 4, kind: input, shape index: {}]   ;;  %s3931_s5 = inlined_call_operand.vmem [shape: bf16[15,256], index: 5, kind: input, shape index: {}]   ;;  %s3932_s6 = inlined_call_operand.vmem [shape: f32[1,128], index: 6, kind: input, shape index: {}]   ;;  %s3933_s7 = inlined_call_operand.vmem [shape: f32[1,128], index: 7, kind: input, shape index: {}]   ;;  %s3934_s8 = inlined_call_operand.vmem [shape: bf16[128,384], index: 8, kind: input, shape index: {}]   ;;  %s3935_s9 = inlined_call_operand.vmem [shape: bf16[128,256], index: 9, kind: input, shape index: {}]   ;;  %s3936_s10 = inlined_call_operand.vmem [shape: f32[1,128], index: 10, kind: input, shape index: {}]   ;;  %s3937_s11 = inlined_call_operand.vmem [shape: f32[1,128], index: 11, kind: input, shape index: {}]   ;;  %s3938_s12 = inlined_call_operand.vmem [shape: bf16[128,256], index: 12, kind: input, shape index: {}]   ;;  %s3939_s13 = inlined_call_operand.vmem [shape: bf16[128,128], index: 13, kind: input, shape index: {}]   ;;  %s3940_s14 = inlined_call_operand.vmem [shape: f32[1,128], index: 14, kind: input, shape index: {}]   ;;  %s3941_s15 = inlined_call_operand.vmem [shape: bf16[128,256], index: 15, kind: input, shape index: {}]   ;;  %s3942_s16 = inlined_call_operand.vmem [shape: f32[1,256], index: 16, kind: input, shape index: {}]   ;;  %s3943_s17 = inlined_call_operand.vmem [shape: bf16[128,128], index: 17, kind: input, shape index: {}]   ;;  %s3944_s18 = inlined_call_operand.vmem [shape: f32[1,128], index: 18, kind: input, shape index: {}]   ;;  %s3945_s19 = inlined_call_operand.vmem [shape: bf16[128,128], index: 19, kind: input, shape index: {}]   ;;  %s3946_s20 = inlined_call_operand.vmem [shape: f32[1,128], index: 20, kind: input, shape index: {}]   ;;  %s3947_s21 = inlined_call_operand.vmem [shape: f32[2,8,256], index: 21, kind: output, shape index: {}]  }
   0x1   :  { %3951 = sst [smem:[#allocation3_spill]] %s3926_s0 }
   0x2   :  { %3952 = sst [smem:[#allocation4_spill]] %s3927_s1 }
   0x3   :  { %3953 = sst [smem:[#allocation5_spill]] %s3928_s2  ;;  %s3292_s2 = smov 0  }
   0x4   :  { %3954 = sst [smem:[#allocation6_spill]] %s3929_s3 }
   0x5   :  { %3955 = sst [smem:[#allocation7_spill]] %s3930_s4 }
   0x6   :  { %3956 = sst [smem:[#allocation8_spill]] %s3931_s5 }
   0x7   :  { %3957 = sst [smem:[#allocation9_spill]] %s3946_s20 }
   0x8   :  { %3958 = sst [smem:[#allocation10_spill]] %s3947_s21 }
   0x9 LB: > { %3959 = sst [smem:[#allocation2_spill]] %s3176_s2  ;;  %s2713_s25 = sadd.s32 4294967295, %s3176_s2   ;;  %s3176_s2 = sphi %s3292_s2, %s31_s2  }
   0xa   : > { %p2717_p0 = scmp.ge.s32.totalorder %s3176_s2, 1  ;;  %p615_p1 = scmp.lt.s32.totalorder %s3176_s2, 3 }
   0xc   : > { %p616_p2 = pnand %p2717_p0, %p615_p1 }
   0xd   : > { %s3960_s3 = sld [smem:[#allocation7_spill]] (!%p616_p2)  ;;  %vm764_vm0 = vcmask (!%p616_p2), 1042432   ;;  %vm765_vm1 = vcmask (!%p616_p2), 1043456   ;;  %p688_p3 = scmp.lt.s32.totalorder (!%p616_p2), %s2713_s25, 1  ;;  %v3178_v4 = vmov (!%p616_p2), 65535   ;;  %v3179_v7 = vmov (!%p616_p2), 0  }
   0xe   : > { %619 = sbr.rel (%p616_p2) target bundleno = 1785 (0x6f9), region = 104  ;;  %v766_v5 = vsel (!%p616_p2), %vm764_vm0, 4294967295, %v3178_v4  ;;  %809 = vmatprep.mubr.bf16.mxu0 (!%p616_p2), %v3179_v7  ;;  %3025 = vset.pattern.permute.xlu0 (!%p616_p2), %v3179_v7  ;;  %vm901_vm2 = vcmask (!%p616_p2), 1046528   ;;  %v3180_v11 = vmov (!%p616_p2), 0.0   ;;  %vm3181_vm3 = vmmov (!%p616_p2), 0   ;;  %s3961_s26 = sld [smem:[#allocation3_spill]] (!%p616_p2) }
   0xf   : > { %v767_v8 = vsel (!%p616_p2), %vm765_vm1, %v766_v5, 0  ;;  %2911 = vmatprep.subr.bf16.mxu1 (!%p616_p2), %v3180_v11  ;;  %2913 = vmatprep.mubr.msk.bf16.mxu1 (!%p616_p2), %vm3181_vm3, %v3180_v11  ;;  %vm760_vm4 = vcmask (!%p616_p2), 187392   ;;  %s3962_s0 = sld [smem:[#allocation4_spill]] (!%p616_p2)  ;;  %vm902_vm5 = vcmask (!%p616_p2), 1047552   ;;  %v903_v14 = vsel (!%p616_p2), %vm901_vm2, 4294967295, %v3178_v4  ;;  %s3963_s20 = sld [smem:[#allocation8_spill]] (!%p616_p2) }
  0x10   : > { %3026 = vset.pattern.permute.xlu1 (!%p616_p2), %v3179_v7  ;;  %v904_v17 = vsel (!%p616_p2), %vm902_vm5, %v903_v14, 0  ;;  %vm888_vm6 = vcmask (!%p616_p2), 121856   ;;  %v3041_v34 = vld [vmem:[%s3934_s8] ss:$12 sps:$4 sm:$0xff] (!%p616_p2)   ;;  %v3043_v35 = vld [vmem:[%s3934_s8 + $0x4] ss:$12 sps:$4 sm:$0xff] (!%p616_p2)   ;;  %v1164_v48 = vlaneseq (!%p616_p2) }
  0x11   : > { %v3047_v36 = vld [vmem:[%s3934_s8 + $0x1c] ss:$12 sps:$4 sm:$0xff] (!%p616_p2)   ;;  %v3045_v37 = vld [vmem:[%s3934_s8 + $0x18] ss:$12 sps:$4 sm:$0xff] (!%p616_p2)   ;;  %v3051_v38 = vld [vmem:[%s3934_s8 + $0x34] ss:$12 sps:$4 sm:$0xff] (!%p616_p2)  }
  0x12   : > { %v3049_v39 = vld [vmem:[%s3934_s8 + $0x30] ss:$12 sps:$4 sm:$0xff] (!%p616_p2)   ;;  %v3055_v40 = vld [vmem:[%s3934_s8 + $0x4c] ss:$12 sps:$4 sm:$0xff] (!%p616_p2)   ;;  %v3053_v41 = vld [vmem:[%s3934_s8 + $0x48] ss:$12 sps:$4 sm:$0xff] (!%p616_p2)  }
  0x13   : > { %v3027_v0 = vld [vmem:[%s3960_s3 + $0x4] ss:$12 sps:$4 sm:$0xff] (!%p616_p2)   ;;  %v3029_v1 = vld [vmem:[%s3960_s3] ss:$12 sps:$4 sm:$0xff] (!%p616_p2)   ;;  %v734_v2 = vld [vmem:[%s3960_s3 + $0x18] sm:$0xff] (!%p616_p2)  ;;  %s3965_s28 = sld [smem:[#allocation5_spill]] (!%p616_p2) }
  0x14   : > { %777 = vmatprep.subr.bf16.mxu0 (!%p616_p2), %v3027_v0  ;;  %v2730_v3 = vcombine.high (!%p616_p2), %v734_v2, %v734_v2  ;;  %v2729_v6 = vcombine.low (!%p616_p2), %v734_v2, %v734_v2  ;;  %v3032_v12 = vld [vmem:[%s3960_s3 + $0x8] ss:$12 sps:$4 sm:$0xff] (!%p616_p2)   ;;  %v3033_v13 = vld [vmem:[%s3960_s3 + $0x20] ss:$0 sps:$4 sm:$0xff] (!%p616_p2)   ;;  %v3059_v42 = vld [vmem:[%s3934_s8 + $0x64] ss:$12 sps:$4 sm:$0xff] (!%p616_p2)  }
  0x15   : > { %778 = vmatpush1.bf16.msra.mxu0 %v3029_v1  ;;  %s3970_s25 = smov (!%p688_p3, %s2713_s25), 1  ;;  %v3036_v16 = vld [vmem:[%s3963_s20 + $0x4] ss:$8 sps:$4 sm:$0xff]   ;;  %v775_v18 = vand.u32 %v3033_v13, %v767_v8  ;;  %v3034_v19 = vld [vmem:[%s3963_s20] ss:$8 sps:$4 sm:$0xff]   ;;  %vm985_vm7 = vcmask 64512  }
  0x16   : > { %v772_v9 = vand.u32 %v2730_v3, %v767_v8  ;;  %v769_v10 = vand.u32 %v2729_v6, %v767_v8  ;;  %s2718_s30 = sshll.u32 %s3970_s25, 2  ;;  %s2852_s5 = sshll.u32 %s3970_s25, 5  ;;  %v909_v20 = vand.u32 %v3036_v16, %v904_v17  ;;  %v906_v21 = vand.u32 %v3034_v19, %v904_v17  ;;  %v3057_v43 = vld [vmem:[%s3934_s8 + $0x60] ss:$12 sps:$4 sm:$0xff]   ;;  %v3063_v44 = vld [vmem:[%s3934_s8 + $0x7c] ss:$12 sps:$4 sm:$0xff]  }
  0x17   : > { %s691_s27 = scalar_lea.vmem %s3961_s26, %s2718_s30  ;;  %s3331_s4 = scalar_lea.vmem %s3962_s0, %s2852_s5  ;;  %v3061_v45 = vld [vmem:[%s3934_s8 + $0x78] ss:$12 sps:$4 sm:$0xff]   ;;  %v3410_v54 = vshrl.u32 %v1164_v48, 7  ;;  %v3044_v55 = vld [vmem:[%s3934_s8 + $0x8] ss:$12 sps:$4 sm:$0xff]   ;;  %vm1137_vm8 = vcmask 1041409  }
  0x18   : > { %779 = vmatprep.subr.bf16.mxu0 %v772_v9  ;;  %v721_v15 = vld [vmem:[%s691_s27] sm:$0xf]  ;;  %v3038_v23 = vld [vmem:[%s3331_s4 + $0x8] sm:$0xff]   ;;  %v3039_v24 = vld [vmem:[%s3331_s4 + $0x10] sm:$0xff]   ;;  %s2853_s5 = sshll.u32 %s3970_s25, 6  ;;  %s3964_s26 = sld [smem:[#allocation6_spill]] }
  0x19   : > { %780 = vmatpush1.bf16.msra.mxu0 %v769_v10  ;;  %v3037_v22 = vld [vmem:[%s3331_s4] sm:$0xff]   ;;  %v3040_v25 = vld [vmem:[%s3331_s4 + $0x18] sm:$0xff]   ;;  %s3404_s29 = scalar_lea.vmem %s3965_s28, %s2718_s30  ;;  %v3421_v58 = vsub.s32 0, %v3410_v54  ;;  %v3428_v62 = vsub.s32 1, %v3410_v54  ;;  %v1188_v6 = vsub.s32 2, %v3410_v54  ;;  %v1196_v16 = vsub.s32 3, %v3410_v54 }
  0x1a   : > { %2903 = vmatprep.subr.bf16.mxu0 %v3180_v11  ;;  %v3408_v53 = vld [vmem:[%s3404_s29] sm:$0xf]  ;;  %v3052_v1 = vld [vmem:[%s3934_s8 + $0x38] ss:$12 sps:$4 sm:$0xff]   ;;  %v3056_v8 = vld [vmem:[%s3934_s8 + $0x50] ss:$12 sps:$4 sm:$0xff]  }
  0x1b   : > { %v3048_v59 = vld [vmem:[%s3934_s8 + $0x20] ss:$12 sps:$4 sm:$0xff]   ;;  %vm1139_vm9 = vcmask 1042434   ;;  %vm1141_vm10 = vcmask 1043459   ;;  %vm1143_vm11 = vcmask 1044484   ;;  %vm1145_vm12 = vcmask 1045509  }
  0x1c   : > { %2732 = vmatmul.mubr.msk.bf16.vlgmr.msra.gmra.mrb[0].mxu0 %vm760_vm4, %v721_v15  ;;  %v3449_v9 = vld [vmem:[%s3933_s7] ss:$0 sm:$0xff]  ;;  %vm1147_vm13 = vcmask 1046534   ;;  %vm1149_vm14 = vcmask 1047559   ;;  %s3967_s4 = sld [smem:[#allocation10_spill]] }
  0x1d   : > { %2904 = vmatpush3.bf16.msra.mxu0 %v3032_v12  ;;  %2907 = vmatprep.mubr.msk.bf16.mxu0 %vm3181_vm3, %v3180_v11 }
  0x1e   : > { %2905 = vmatprep.subr.bf16.mxu0 %v3180_v11  ;;  %s705_s27 = scalar_lea.vmem %s3964_s26, %s2853_s5 }
  0x1f   : > { %v713_v26 = vld [vmem:[%s705_s27] sm:$0xff]  ;;  %v715_v27 = vld [vmem:[%s705_s27 + $0x10] sm:$0xff]  ;;  %v714_v28 = vld [vmem:[%s705_s27 + $0x8] sm:$0xff] }
  0x20   : > { %1034 = vperm.xlu0 %3025, %v713_v26   ;;  %1044 = vperm.xlu1 %3026, %v715_v27   ;;  %v716_v29 = vld [vmem:[%s705_s27 + $0x18] sm:$0xff]  ;;  %v717_v30 = vld [vmem:[%s705_s27 + $0x20] sm:$0xff]  ;;  %v718_v31 = vld [vmem:[%s705_s27 + $0x28] sm:$0xff] }
  0x21   : > { %2906 = vmatpush3.bf16.msra.mxu0 %v775_v18  ;;  %v719_v32 = vld [vmem:[%s705_s27 + $0x30] sm:$0xff]  ;;  %v720_v33 = vld [vmem:[%s705_s27 + $0x38] sm:$0xff]  ;;  %s3966_s27 = sld [smem:[#allocation9_spill]] }
  0x22   : > { %911 = vmatprep.subr.bf16.mxu0 %v909_v20 }
  0x24   : > { %2908 = vmatmul.mubr.msk.bf16.vlgmr.msra.gmra.mrb[4].mxu0 %vm760_vm4, %v721_v15  ;;  %1039 = vperm.xlu0 %3025, %v714_v28  }
  0x25   : > { %912 = vmatpush1.bf16.msra.mxu0 %v906_v21  ;;  %943 = vmatprep.mubr.bf16.mxu0 %v3179_v7 }
  0x26   : > { %1049 = vperm.xlu1 %3026, %v716_v29   ;;  %1398 = vmatprep.subr.bf16.mxu0 %v3043_v35 }
  0x28   : > { %1054 = vperm.xlu0 %3025, %v717_v30  }
  0x2a   : > { %1059 = vperm.xlu1 %3026, %v718_v31  }
  0x2c   : > { %2740 = vmatmul.mubr.msk.bf16.vlgmr.msra.gmra.mrb[8].mxu0 %vm888_vm6, %v3037_v22  ;;  %1064 = vperm.xlu0 %3025, %v719_v32  }
  0x2d   : > { %953 = vmatprep.mubr.bf16.mxu0 %v3179_v7  ;;  %1399 = vmatpush1.bf16.msra.mxu0 %v3041_v34 }
  0x2e   : > { %1069 = vperm.xlu1 %3026, %v720_v33   ;;  %1400 = vmatprep.subr.bf16.mxu0 %v3047_v36  ;;  %v1204_v36 = vsub.s32 4, %v3410_v54 }
  0x31   : > { %1401 = vmatpush1.bf16.msra.mxu0 %v3045_v37 }
  0x32   : > { %1402 = vmatprep.subr.bf16.mxu0 %v3051_v38 }
  0x34   : > { %2741 = vmatmul.mubr.msk.bf16.gmra.mrb[12].mxu0 %vm888_vm6, %v3038_v23  ;;  %v3060_v23 = vld [vmem:[%s3934_s8 + $0x68] ss:$12 sps:$4 sm:$0xff]  }
  0x35   : > { %963 = vmatprep.mubr.bf16.mxu0 %v3179_v7  ;;  %1403 = vmatpush1.bf16.msra.mxu0 %v3049_v39 }
  0x36   : > { %1404 = vmatprep.subr.bf16.mxu0 %v3055_v40 }
  0x39   : > { %1405 = vmatpush1.bf16.msra.mxu0 %v3053_v41 }
  0x3a   : > { %1406 = vmatprep.subr.bf16.mxu0 %v3059_v42 }
  0x3c   : > { %2742 = vmatmul.mubr.msk.bf16.gmra.mrb[16].mxu0 %vm888_vm6, %v3039_v24 }
  0x3d   : > { %973 = vmatprep.mubr.bf16.mxu0 %v3179_v7  ;;  %1407 = vmatpush1.bf16.msra.mxu0 %v3057_v43 }
  0x3e   : > { %1408 = vmatprep.subr.bf16.mxu0 %v3063_v44  ;;  %v1212_v44 = vsub.s32 5, %v3410_v54 }
  0x41   : > { %1409 = vmatpush1.bf16.msra.mxu0 %v3061_v45 }
  0x44   : > { %2743 = vmatmul.mubr.msk.bf16.gmra.mrb[20].mxu0 %vm888_vm6, %v3040_v25 }
  0x45   : > { %1430 = vmatprep.mubr.bf16.mxu0 %v3179_v7 }
  0x9f   : > { %v3434_v0 = vpop.permute.xlu0 %1034  ;;  %v3471_v29 = vpop.permute.xlu1 %1044 }
  0xa3   : > { %v3455_v17 = vpop.permute.xlu0 %1039 }
  0xef   : > { %v3397_v46 = vpop.f32.mrb[0].mxu0 }
  0xf0   : > { %v813_v47 = vpop.f32.mrb[1].mxu0 }
  0xf1   : > { %v984_v49 = vpack.c.bf16 %v813_v47, %v813_v47  ;;  %v815_v50 = vpop.f32.mrb[2].mxu0 }
  0xf2   : > { %v816_v51 = vpop.f32.mrb[3].mxu0  ;;  %v3483_v50 = vpop.permute.xlu1 %1049 }
  0xf3   : > { %v990_v52 = vsel %vm765_vm1, %v984_v49, 0 }
  0xf4   : > { %2912 = vmatpush3.bf16.msra.mxu1 %v990_v52 }
  0xf5   : > { %2917 = vmatprep.subr.bf16.mxu1 %v3180_v11 }
  0xf7   : > { %2914 = vmatmul.mubr.msk.bf16.vlgmr.msra.gmra.mrb[0].mxu1 %vm985_vm7, %v3408_v53  ;;  %v3418_v56 = vpop.f32.mrb[4].mxu0 }
  0xf8   : > { %v2909_v57 = vpop.f32.mrb[5].mxu0  ;;  %2918 = vmatpush3.bf16.msra.mxu1 %v3044_v55  ;;  %2933 = vmatprep.mubr.msk.bf16.mxu1 %vm3181_vm3, %v3180_v11  ;;  %v1167_v63 = vrot.slane %v3418_v56, %v3421_v58  ;;  %v1181_v2 = vrot.slane %v3418_v56, %v3428_v62  ;;  %v1189_v22 = vrot.slane %v3418_v56, %v1188_v6 }
  0xf9   : > { %v855_v60 = vpop.f32.mrb[6].mxu0  ;;  %2919 = vmatprep.subr.bf16.mxu1 %v3180_v11  ;;  %v1197_v28 = vrot.slane %v3418_v56, %v1196_v16  ;;  %v1205_v49 = vrot.slane %v3418_v56, %v1204_v36  ;;  %v1213_v55 = vrot.slane %v3418_v56, %v1212_v44 }
  0xfa   : > { %v2910_v61 = vpop.f32.mrb[7].mxu0 }
  0xfc   : > { %2920 = vmatpush3.bf16.msra.mxu1 %v3048_v59 }
  0xfd   : > { %2921 = vmatprep.subr.bf16.mxu1 %v3180_v11 }
  0xff   : > { %v945_v3 = vpop.f32.mrb[8].mxu0 }
 0x100   : > { %v1168_v4 = vadd.f32 %v1167_v63, %v945_v3  ;;  %v947_v5 = vpop.f32.mrb[9].mxu0  ;;  %2922 = vmatpush3.bf16.msra.mxu1 %v3052_v1  ;;  %v1220_v1 = vsub.s32 6, %v3410_v54 }
 0x101   : > { %v949_v10 = vpop.f32.mrb[10].mxu0  ;;  %v1072_v12 = vmul.f32 %v3434_v0, %v947_v5  ;;  %2923 = vmatprep.subr.bf16.mxu1 %v3180_v11 }
 0x102   : > { %v1169_v13 = vadd.f32 %v1168_v4, %v3418_v56  ;;  %v1182_v14 = vadd.f32 %v1181_v2, %v949_v10  ;;  %v951_v15 = vpop.f32.mrb[11].mxu0  ;;  %v3490_v2 = vpop.permute.xlu0 %1054 }
 0x103   : > { %v1080_v18 = vrot.slane %v1072_v12, 4  ;;  %v1073_v19 = vmul.f32 %v3455_v17, %v951_v15  ;;  %v3499_v15 = vpop.permute.xlu1 %1059 }
 0x104   : > { %v1176_v20 = vadd.f32 %v3449_v9, %v1169_v13  ;;  %v1183_v21 = vadd.f32 %v1182_v14, %v3418_v56  ;;  %2924 = vmatpush3.bf16.msra.mxu1 %v3056_v8  ;;  %v1228_v13 = vsub.s32 7, %v3410_v54 }
 0x105   : > { %v1081_v24 = vadd.f32 %v1080_v18, %v1072_v12  ;;  %v1086_v25 = vrot.slane %v1073_v19, 4  ;;  %2925 = vmatprep.subr.bf16.mxu1 %v3180_v11 }
 0x106   : > { %v1177_v26 = vmax.f32 %v1176_v20, 0.0  ;;  %v1184_v27 = vadd.f32 %v3449_v9, %v1183_v21  ;;  %v1221_v21 = vrot.slane %v3418_v56, %v1220_v1 }
 0x107   : > { %v955_v30 = vpop.f32.mrb[12].mxu0  ;;  %v1082_v31 = vrot.slane %v1081_v24, 2  ;;  %v1087_v32 = vadd.f32 %v1086_v25, %v1073_v19  ;;  %v3509_v25 = vpop.permute.xlu0 %1064 }
 0x108   : > { %v1185_v33 = vmax.f32 %v1184_v27, 0.0  ;;  %v1190_v34 = vadd.f32 %v1189_v22, %v955_v30  ;;  %v957_v35 = vpop.f32.mrb[13].mxu0  ;;  %2926 = vmatpush3.bf16.msra.mxu1 %v3060_v23  ;;  %v1229_v23 = vrot.slane %v3418_v56, %v1228_v13 }
 0x109   : > { %v959_v37 = vpop.f32.mrb[14].mxu0  ;;  %v1083_v38 = vadd.f32 %v1082_v31, %v1081_v24  ;;  %v1088_v39 = vrot.slane %v1087_v32, 2  ;;  %2927 = vmatprep.subr.bf16.mxu1 %v3180_v11  ;;  %v1074_v63 = vmul.f32 %v3471_v29, %v957_v35 }
 0x10a   : > { %v3475_v40 = vpack.c.bf16 %v1185_v33, %v1177_v26  ;;  %v1191_v41 = vadd.f32 %v1190_v34, %v3418_v56  ;;  %v1198_v42 = vadd.f32 %v1197_v28, %v959_v37  ;;  %v961_v43 = vpop.f32.mrb[15].mxu0  ;;  %v3513_v34 = vpop.permute.xlu1 %1069 }
 0x10b   : > { %v1084_v45 = vrot.slane %v1083_v38, 1  ;;  %v1089_v47 = vadd.f32 %v1088_v39, %v1087_v32  ;;  %v1075_v5 = vmul.f32 %v3483_v50, %v961_v43  ;;  %v1092_v20 = vrot.slane %v1074_v63, 4 }
 0x10c   : > { %v1199_v48 = vadd.f32 %v1198_v42, %v3418_v56  ;;  %v1192_v26 = vadd.f32 %v3449_v9, %v1191_v41 }
 0x10d   : > { %v1085_v51 = vadd.f32 %v1084_v45, %v1083_v38  ;;  %v1090_v52 = vrot.slane %v1089_v47, 1  ;;  %v1098_v22 = vrot.slane %v1075_v5, 4  ;;  %v1093_v31 = vadd.f32 %v1092_v20, %v1074_v63 }
 0x10e   : > { %v1200_v30 = vadd.f32 %v3449_v9, %v1199_v48 }
 0x10f   : > { %v965_v57 = vpop.f32.mrb[16].mxu0  ;;  %v1091_v59 = vadd.f32 %v1090_v52, %v1089_v47  ;;  %v1099_v38 = vadd.f32 %v1098_v22, %v1075_v5 }
 0x110   : > { %v1206_v60 = vadd.f32 %v1205_v49, %v965_v57  ;;  %v967_v61 = vpop.f32.mrb[17].mxu0  ;;  %v1193_v49 = vmax.f32 %v1192_v26, 0.0  ;;  %v1094_v57 = vrot.slane %v1093_v31, 2 }
 0x111   : > { %v969_v3 = vpop.f32.mrb[18].mxu0  ;;  %v3493_v4 = vsel %vm1137_vm8, %v1091_v59, %v1085_v51  ;;  %v1076_v14 = vmul.f32 %v3490_v2, %v967_v61  ;;  %v1100_v63 = vrot.slane %v1099_v38, 2 }
 0x112   : > { %v1207_v8 = vadd.f32 %v1206_v60, %v3418_v56  ;;  %v1214_v10 = vadd.f32 %v1213_v55, %v969_v3  ;;  %v971_v12 = vpop.f32.mrb[19].mxu0  ;;  %v1201_v55 = vmax.f32 %v1200_v30, 0.0  ;;  %v1095_v20 = vadd.f32 %v1094_v57, %v1093_v31 }
 0x113   : > { %v1077_v18 = vmul.f32 %v3499_v15, %v971_v12  ;;  %v1104_v24 = vrot.slane %v1076_v14, 4 }
 0x114   : > { %v1215_v19 = vadd.f32 %v1214_v10, %v3418_v56  ;;  %v1208_v35 = vadd.f32 %v3449_v9, %v1207_v8 }
 0x115   : > { %v1110_v28 = vrot.slane %v1077_v18, 4  ;;  %v1105_v45 = vadd.f32 %v1104_v24, %v1076_v14 }
 0x116   : > { %v1216_v42 = vadd.f32 %v3449_v9, %v1215_v19  ;;  %v1209_v61 = vmax.f32 %v1208_v35, 0.0 }
 0x117   : > { %v975_v27 = vpop.f32.mrb[20].mxu0  ;;  %v1111_v48 = vadd.f32 %v1110_v28, %v1077_v18  ;;  %v1106_v14 = vrot.slane %v1105_v45, 2 }
 0x118   : > { %v1222_v32 = vadd.f32 %v1221_v21, %v975_v27  ;;  %v977_v33 = vpop.f32.mrb[21].mxu0  ;;  %v1217_v8 = vmax.f32 %v1216_v42, 0.0  ;;  %v3523_v27 = vpack.c.bf16 %v1201_v55, %v1193_v49 }
 0x119   : > { %v979_v37 = vpop.f32.mrb[22].mxu0  ;;  %v1078_v39 = vmul.f32 %v3509_v25, %v977_v33  ;;  %v1112_v19 = vrot.slane %v1111_v48, 2  ;;  %v1107_v26 = vadd.f32 %v1106_v14, %v1105_v45 }
 0x11a   : > { %v1223_v43 = vadd.f32 %v1222_v32, %v3418_v56  ;;  %v1230_v41 = vadd.f32 %v1229_v23, %v979_v37  ;;  %v981_v47 = vpop.f32.mrb[23].mxu0  ;;  %v1101_v23 = vadd.f32 %v1100_v63, %v1099_v38  ;;  %v1096_v32 = vrot.slane %v1095_v20, 1  ;;  %v3068_v63 = vld [vmem:[%s3934_s8 + $0x98] ss:$12 sps:$4 sm:$0xff]  }
 0x11b   : > { %v1116_v51 = vrot.slane %v1078_v39, 4  ;;  %v1079_v52 = vmul.f32 %v3513_v34, %v981_v47  ;;  %v1113_v30 = vadd.f32 %v1112_v19, %v1111_v48  ;;  %v1108_v37 = vrot.slane %v1107_v26, 1 }
 0x11c   : > { %v1224_v59 = vadd.f32 %v3449_v9, %v1223_v43  ;;  %v1231_v60 = vadd.f32 %v1230_v41, %v3418_v56  ;;  %v3525_v56 = vpack.c.bf16 %v1217_v8, %v1209_v61  ;;  %v1102_v35 = vrot.slane %v1101_v23, 1  ;;  %v3065_v61 = vld [vmem:[%s3934_s8 + $0x90] ss:$12 sps:$4 sm:$0xff]  }
 0x11d   : > { %v1117_v3 = vadd.f32 %v1116_v51, %v1078_v39  ;;  %v1122_v5 = vrot.slane %v1079_v52, 4  ;;  %v1114_v39 = vrot.slane %v1113_v30, 1  ;;  %v1097_v42 = vadd.f32 %v1096_v32, %v1095_v20  ;;  %v3072_v8 = vld [vmem:[%s3934_s8 + $0xb0] ss:$12 sps:$4 sm:$0xff]  }
 0x11e   : > { %v1225_v10 = vmax.f32 %v1224_v59, 0.0  ;;  %v1232_v12 = vadd.f32 %v3449_v9, %v1231_v60  ;;  %v1103_v43 = vadd.f32 %v1102_v35, %v1101_v23  ;;  %v1109_v38 = vadd.f32 %v1108_v37, %v1107_v26  ;;  %v3067_v60 = vld [vmem:[%s3934_s8 + $0x94] ss:$12 sps:$4 sm:$0xff]   ;;  %v3082_v37 = vld [vmem:[%s3935_s9 + $0x30] ss:$8 sps:$4 sm:$0xff]  }
 0x11f   : > { %v1123_v18 = vadd.f32 %v1122_v5, %v1079_v52  ;;  %v1118_v22 = vrot.slane %v1117_v3, 2  ;;  %v1115_v47 = vadd.f32 %v1114_v39, %v1113_v30  ;;  %v1140_v49 = vsel %vm1139_vm9, %v1097_v42, %v3493_v4  ;;  %v3064_v4 = vld [vmem:[%s3934_s8 + $0x80] ss:$12 sps:$4 sm:$0xff]   ;;  %1410 = vmatprep.subr.bf16.mxu0 %v3067_v60  ;;  %v3069_v5 = vld [vmem:[%s3934_s8 + $0xa8] ss:$12 sps:$4 sm:$0xff]  }
 0x120   : > { %v1233_v21 = vmax.f32 %v1232_v12, 0.0  ;;  %v1142_v48 = vsel %vm1141_vm10, %v1103_v43, %v1140_v49  ;;  %2928 = vmatpush3.bf16.msra.mxu1 %v3064_v4  ;;  %1411 = vmatpush1.bf16.msra.mxu0 %v3065_v61  ;;  %v3073_v26 = vld [vmem:[%s3935_s9] ss:$8 sps:$4 sm:$0xff]   ;;  %v3078_v32 = vld [vmem:[%s3935_s9 + $0x14] ss:$8 sps:$4 sm:$0xff]  }
 0x121   : > { %v1124_v24 = vrot.slane %v1123_v18, 2  ;;  %v1119_v33 = vadd.f32 %v1118_v22, %v1117_v3  ;;  %v1144_v52 = vsel %vm1143_vm11, %v1109_v38, %v1142_v48  ;;  %2929 = vmatprep.subr.bf16.mxu1 %v3180_v11  ;;  %v3071_v3 = vld [vmem:[%s3934_s8 + $0xac] ss:$12 sps:$4 sm:$0xff]   ;;  %v3079_v35 = vld [vmem:[%s3935_s9 + $0x20] ss:$8 sps:$4 sm:$0xff]   ;;  %v3103_v48 = vld [vmem:[%s3939_s13 + $0x30] sm:$0xff]  }
 0x122   : > { %v3527_v28 = vpack.c.bf16 %v1233_v21, %v1225_v10  ;;  %v1146_v55 = vsel %vm1145_vm12, %v1115_v47, %v1144_v52  ;;  %1412 = vmatprep.subr.bf16.mxu0 %v3071_v3  ;;  %v3075_v10 = vld [vmem:[%s3935_s9 + $0x4] ss:$8 sps:$4 sm:$0xff]   ;;  %v3085_v42 = vld [vmem:[%s3935_s9 + $0x40] ss:$8 sps:$4 sm:$0xff]   ;;  %v3088_v43 = vld [vmem:[%s3935_s9 + $0x50] ss:$8 sps:$4 sm:$0xff]  }
 0x123   : > { %v1125_v9 = vadd.f32 %v1124_v24, %v1123_v18  ;;  %v1120_v31 = vrot.slane %v1119_v33, 1  ;;  %v2745_v18 = vld [vmem:[%s3932_s6] ss:$0 sm:$0xff]  ;;  %v3087_v39 = vld [vmem:[%s3935_s9 + $0x44] ss:$8 sps:$4 sm:$0xff]   ;;  %v3104_v52 = vld [vmem:[%s3939_s13 + $0x38] sm:$0xff]  }
 0x124   : > { %2930 = vmatpush3.bf16.msra.mxu1 %v3068_v63  ;;  %1413 = vmatpush1.bf16.msra.mxu0 %v3069_v5  ;;  %v3091_v38 = vld [vmem:[%s3935_s9 + $0x60] ss:$8 sps:$4 sm:$0xff]   ;;  %v3096_v47 = vld [vmem:[%s3935_s9 + $0x74] ss:$8 sps:$4 sm:$0xff]   ;;  %v3107_v3 = vld [vmem:[%s3938_s12 + $0x4] ss:$8 sps:$4 sm:$0xff]  }
 0x125   : > { %v1126_v41 = vrot.slane %v1125_v9, 1  ;;  %v1121_v45 = vadd.f32 %v1120_v31, %v1119_v33  ;;  %2931 = vmatprep.subr.bf16.mxu1 %v3180_v11  ;;  %1575 = vmatprep.subr.bf16.mxu0 %v3075_v10  ;;  %v3081_v33 = vld [vmem:[%s3935_s9 + $0x24] ss:$8 sps:$4 sm:$0xff]   ;;  %v3090_v31 = vld [vmem:[%s3935_s9 + $0x54] ss:$8 sps:$4 sm:$0xff]  }
 0x126   : > { %v3097_v49 = vld [vmem:[%s3939_s13] sm:$0xff]  }
 0x127   : > { %v1127_v51 = vadd.f32 %v1126_v41, %v1125_v9  ;;  %v1148_v57 = vsel %vm1147_vm13, %v1121_v45, %v1146_v55  ;;  %v3084_v9 = vld [vmem:[%s3935_s9 + $0x34] ss:$8 sps:$4 sm:$0xff]   ;;  %v3093_v41 = vld [vmem:[%s3935_s9 + $0x64] ss:$8 sps:$4 sm:$0xff]   ;;  %v3094_v45 = vld [vmem:[%s3935_s9 + $0x70] ss:$8 sps:$4 sm:$0xff]  }
 0x128   : > { %2932 = vmatpush3.bf16.msra.mxu1 %v3072_v8 }
 0x129   : > { %v1150_v59 = vsel %vm1149_vm14, %v1127_v51, %v1148_v57  ;;  %2937 = vmatprep.subr.bf16.mxu1 %v3180_v11  ;;  %v3102_v51 = vld [vmem:[%s3939_s13 + $0x28] sm:$0xff]  }
 0x1ca   : > { %v1026_v12 = vpop.f32.mrb[0].mxu1 }
 0x1cb   : > { %v1128_v14 = vadd.f32 %v1026_v12, %v3397_v46  ;;  %v2915_v19 = vpop.f32.mrb[1].mxu1  ;;  %v3076_v46 = vld [vmem:[%s3935_s9 + $0x10] ss:$8 sps:$4 sm:$0xff]   ;;  %v3105_v12 = vld [vmem:[%s3938_s12] ss:$8 sps:$4 sm:$0xff]  }
 0x1cc   : > { %v1029_v20 = vpop.f32.mrb[2].mxu1  ;;  %v3108_v19 = vld [vmem:[%s3938_s12 + $0x10] ss:$8 sps:$4 sm:$0xff]  }
 0x1cd   : > { %v1152_v21 = vadd.f32 %v1150_v59, %v1128_v14  ;;  %v2916_v22 = vpop.f32.mrb[3].mxu1  ;;  %v3110_v14 = vld [vmem:[%s3938_s12 + $0x14] ss:$8 sps:$4 sm:$0xff]   ;;  %v3111_v20 = vld [vmem:[%s3938_s12 + $0x20] ss:$8 sps:$4 sm:$0xff]  }
 0x1ce   : > { %v3119_v22 = vld [vmem:[%s3938_s12 + $0x44] ss:$8 sps:$4 sm:$0xff]  }
 0x1cf   : > { %v1160_v23 = vadd.f32 %v2745_v18, %v1152_v21  ;;  %v3113_v18 = vld [vmem:[%s3938_s12 + $0x24] ss:$8 sps:$4 sm:$0xff]   ;;  %v3114_v21 = vld [vmem:[%s3938_s12 + $0x30] ss:$8 sps:$4 sm:$0xff]  }
 0x1d1   : > { %v1161_v24 = vmax.f32 %v1160_v23, 0.0  ;;  %v3117_v23 = vld [vmem:[%s3938_s12 + $0x40] ss:$8 sps:$4 sm:$0xff]  }
 0x1d3   : > { %v1162_v30 = vpack.c.bf16 %v1161_v24, %v1161_v24  ;;  %v3122_v24 = vld [vmem:[%s3938_s12 + $0x54] ss:$8 sps:$4 sm:$0xff]  }
 0x1d5   : > { %1431 = vmatmul.mubr.bf16.vlgmr.msra.gmra.mrb[24].mxu0 %v1162_v30  ;;  %2934 = vmatmul.mubr.bf16.vlgmr.msra.gmra.mrb[4].mxu1 %v1162_v30 }
 0x1d6   : > { %1576 = vmatpush1.bf16.msra.mxu0 %v3073_v26  ;;  %1607 = vmatprep.mubr.bf16.mxu0 %v3179_v7  ;;  %v3120_v26 = vld [vmem:[%s3938_s12 + $0x50] ss:$8 sps:$4 sm:$0xff]  }
 0x1d7   : > { %1577 = vmatprep.subr.bf16.mxu0 %v3078_v32  ;;  %2939 = vmatprep.mubr.msk.bf16.mxu1 %vm3181_vm3, %v3180_v11 }
 0x1da   : > { %1578 = vmatpush1.bf16.msra.mxu0 %v3076_v46 }
 0x1db   : > { %1579 = vmatprep.subr.bf16.mxu0 %v3081_v33 }
 0x1de   : > { %1580 = vmatpush1.bf16.msra.mxu0 %v3079_v35 }
 0x1df   : > { %1581 = vmatprep.subr.bf16.mxu0 %v3084_v9  ;;  %v3698_v9 = vld [vmem:[%s3937_s11] ss:$0 sm:$0xff] }
 0x1e2   : > { %1582 = vmatpush1.bf16.msra.mxu0 %v3082_v37 }
 0x1e3   : > { %1583 = vmatprep.subr.bf16.mxu0 %v3087_v39 }
 0x1e6   : > { %1584 = vmatpush1.bf16.msra.mxu0 %v3085_v42 }
 0x1e7   : > { %1585 = vmatprep.subr.bf16.mxu0 %v3090_v31 }
 0x1ea   : > { %1586 = vmatpush1.bf16.msra.mxu0 %v3088_v43 }
 0x1eb   : > { %1587 = vmatprep.subr.bf16.mxu0 %v3093_v41 }
 0x1ee   : > { %1588 = vmatpush1.bf16.msra.mxu0 %v3091_v38 }
 0x1ef   : > { %1589 = vmatprep.subr.bf16.mxu0 %v3096_v47 }
 0x1f2   : > { %1590 = vmatpush1.bf16.msra.mxu0 %v3094_v45 }
 0x1f3   : > { %2943 = vmatprep.subr.bf16.mxu0 %v3097_v49 }
 0x1f5   : > { %1608 = vmatmul.mubr.bf16.vlgmr.msra.gmra.mrb[28].mxu0 %v3475_v40  ;;  %v3098_v40 = vld [vmem:[%s3939_s13 + $0x8] sm:$0xff]  }
 0x1f6   : > { %1617 = vmatprep.mubr.bf16.mxu0 %v3179_v7  ;;  %2944 = vmatpush3.bf16.msra.mxu0 %v3097_v49 }
 0x1f7   : > { %2945 = vmatprep.subr.bf16.mxu0 %v3098_v40 }
 0x1fa   : > { %2946 = vmatpush3.bf16.msra.mxu0 %v3098_v40 }
 0x1fd   : > { %1618 = vmatmul.mubr.bf16.gmra.mrb[32].mxu0 %v3523_v27  ;;  %v3099_v27 = vld [vmem:[%s3939_s13 + $0x10] sm:$0xff]  }
 0x1fe   : > { %1627 = vmatprep.mubr.bf16.mxu0 %v3179_v7  ;;  %2947 = vmatprep.subr.bf16.mxu0 %v3099_v27 }
 0x1ff   : > { %2948 = vmatpush3.bf16.msra.mxu0 %v3099_v27 }
 0x205   : > { %1628 = vmatmul.mubr.bf16.gmra.mrb[36].mxu0 %v3525_v56  ;;  %v3100_v56 = vld [vmem:[%s3939_s13 + $0x18] sm:$0xff]  }
 0x206   : > { %1637 = vmatprep.mubr.bf16.mxu0 %v3179_v7  ;;  %2949 = vmatprep.subr.bf16.mxu0 %v3100_v56 }
 0x207   : > { %2950 = vmatpush3.bf16.msra.mxu0 %v3100_v56 }
 0x20d   : > { %1638 = vmatmul.mubr.bf16.gmra.mrb[40].mxu0 %v3527_v28  ;;  %v3101_v28 = vld [vmem:[%s3939_s13 + $0x20] sm:$0xff]  }
 0x20e   : > { %2951 = vmatprep.subr.bf16.mxu0 %v3101_v28 }
 0x20f   : > { %2952 = vmatpush3.bf16.msra.mxu0 %v3101_v28 }
 0x210   : > { %2953 = vmatprep.subr.bf16.mxu0 %v3102_v51 }
 0x213   : > { %2954 = vmatpush3.bf16.msra.mxu0 %v3102_v51 }
 0x214   : > { %2955 = vmatprep.subr.bf16.mxu0 %v3103_v48 }
 0x217   : > { %2956 = vmatpush3.bf16.msra.mxu0 %v3103_v48 }
 0x218   : > { %2957 = vmatprep.subr.bf16.mxu0 %v3104_v52 }
 0x21b   : > { %2958 = vmatpush3.bf16.msra.mxu0 %v3104_v52 }
 0x21c   : > { %2973 = vmatprep.subr.bf16.mxu0 %v3180_v11 }
 0x2a8   : > { %v3647_v55 = vpop.f32.mrb[24].mxu0  ;;  %v3649_v57 = vpop.f32.mrb[4].mxu1 }
 0x2a9   : > { %v1434_v59 = vpop.f32.mrb[25].mxu0  ;;  %v2935_v4 = vpop.f32.mrb[5].mxu1  ;;  %v1780_v30 = vrot.slane %v3649_v57, %v3421_v58  ;;  %v1794_v35 = vrot.slane %v3649_v57, %v3428_v62  ;;  %v1802_v56 = vrot.slane %v3649_v57, %v1188_v6 }
 0x2aa   : > { %v1648_v60 = vpack.c.bf16 %v1434_v59, %v1434_v59  ;;  %v1436_v61 = vpop.f32.mrb[26].mxu0  ;;  %v1476_v63 = vpop.f32.mrb[6].mxu1 }
 0x2ab   : > { %v1437_v5 = vpop.f32.mrb[27].mxu0  ;;  %v2936_v8 = vpop.f32.mrb[7].mxu1  ;;  %v1810_v61 = vrot.slane %v3649_v57, %v1196_v16 }
 0x2ac   : > { %v1650_v10 = vsel %vm765_vm1, %v1648_v60, 0 }
 0x2ad   : > { %2938 = vmatpush3.bf16.msra.mxu1 %v1650_v10 }
 0x2ae   : > { %1947 = vmatprep.subr.bf16.mxu1 %v3107_v3 }
 0x2b0   : > { %2940 = vmatmul.mubr.msk.bf16.vlgmr.msra.gmra.mrb[8].mxu1 %vm985_vm7, %v3408_v53  ;;  %v3116_v53 = vld [vmem:[%s3938_s12 + $0x34] ss:$8 sps:$4 sm:$0xff]  }
 0x2b1   : > { %1948 = vmatpush1.bf16.msra.mxu1 %v3105_v12  ;;  %1979 = vmatprep.mubr.bf16.mxu1 %v3179_v7 }
 0x2b2   : > { %1949 = vmatprep.subr.bf16.mxu1 %v3110_v14 }
 0x2b5   : > { %1950 = vmatpush1.bf16.msra.mxu1 %v3108_v19 }
 0x2b6   : > { %1951 = vmatprep.subr.bf16.mxu1 %v3113_v18 }
 0x2b9   : > { %1952 = vmatpush1.bf16.msra.mxu1 %v3111_v20 }
 0x2ba   : > { %1953 = vmatprep.subr.bf16.mxu1 %v3116_v53 }
 0x2bd   : > { %1954 = vmatpush1.bf16.msra.mxu1 %v3114_v21 }
 0x2be   : > { %1955 = vmatprep.subr.bf16.mxu1 %v3119_v22 }
 0x2c1   : > { %1956 = vmatpush1.bf16.msra.mxu1 %v3117_v23 }
 0x2c2   : > { %1957 = vmatprep.subr.bf16.mxu1 %v3122_v24 }
 0x2c5   : > { %1958 = vmatpush1.bf16.msra.mxu1 %v3120_v26 }
 0x2c8   : > { %v1609_v32 = vpop.f32.mrb[28].mxu0 }
 0x2c9   : > { %v1781_v46 = vadd.f32 %v1780_v30, %v1609_v32  ;;  %v1611_v33 = vpop.f32.mrb[29].mxu0  ;;  %v1818_v30 = vrot.slane %v3649_v57, %v1204_v36 }
 0x2ca   : > { %v1692_v37 = vmul.f32 %v1611_v33, %v3434_v0  ;;  %v1613_v39 = vpop.f32.mrb[30].mxu0 }
 0x2cb   : > { %v1782_v42 = vadd.f32 %v1781_v46, %v3649_v57  ;;  %v1795_v31 = vadd.f32 %v1794_v35, %v1613_v39  ;;  %v1615_v43 = vpop.f32.mrb[31].mxu0 }
 0x2cc   : > { %v1700_v41 = vrot.slane %v1692_v37, 4  ;;  %v1693_v38 = vmul.f32 %v1615_v43, %v3455_v17 }
 0x2cd   : > { %v1789_v47 = vadd.f32 %v3698_v9, %v1782_v42  ;;  %v1796_v45 = vadd.f32 %v1795_v31, %v3649_v57 }
 0x2ce   : > { %v1701_v49 = vadd.f32 %v1700_v41, %v1692_v37  ;;  %v1706_v40 = vrot.slane %v1693_v38, 4  ;;  %v1826_v41 = vrot.slane %v3649_v57, %v1212_v44 }
 0x2cf   : > { %v1797_v27 = vadd.f32 %v3698_v9, %v1796_v45  ;;  %v1790_v52 = vmax.f32 %v1789_v47, 0.0 }
 0x2d0   : > { %v1702_v28 = vrot.slane %v1701_v49, 2  ;;  %v1707_v51 = vadd.f32 %v1706_v40, %v1693_v38  ;;  %v1619_v48 = vpop.f32.mrb[32].mxu0 }
 0x2d1   : > { %v1798_v59 = vmax.f32 %v1797_v27, 0.0  ;;  %v1803_v4 = vadd.f32 %v1802_v56, %v1619_v48  ;;  %v1621_v60 = vpop.f32.mrb[33].mxu0 }
 0x2d2   : > { %v1703_v63 = vadd.f32 %v1702_v28, %v1701_v49  ;;  %v1708_v3 = vrot.slane %v1707_v51, 2  ;;  %v1694_v5 = vmul.f32 %v1621_v60, %v3471_v29  ;;  %v1623_v8 = vpop.f32.mrb[34].mxu0 }
 0x2d3   : > { %v1804_v10 = vadd.f32 %v1803_v4, %v3649_v57  ;;  %v1811_v12 = vadd.f32 %v1810_v61, %v1623_v8  ;;  %v1625_v6 = vpop.f32.mrb[35].mxu0  ;;  %v1847_v14 = vpack.c.bf16 %v1798_v59, %v1790_v52  ;;  %v1834_v8 = vrot.slane %v3649_v57, %v1220_v1 }
 0x2d4   : > { %v1704_v19 = vrot.slane %v1703_v63, 1  ;;  %v1709_v18 = vadd.f32 %v1708_v3, %v1707_v51  ;;  %v1712_v20 = vrot.slane %v1694_v5, 4  ;;  %v1695_v53 = vmul.f32 %v1625_v6, %v3483_v50 }
 0x2d5   : > { %v1805_v21 = vadd.f32 %v3698_v9, %v1804_v10  ;;  %v1812_v22 = vadd.f32 %v1811_v12, %v3649_v57  ;;  %2959 = vmatprep.mubr.bf16.mxu0 %v1847_v14 }
 0x2d6   : > { %v1710_v16 = vrot.slane %v1709_v18, 1  ;;  %v1713_v23 = vadd.f32 %v1712_v20, %v1694_v5  ;;  %v1718_v24 = vrot.slane %v1695_v53, 4  ;;  %v1705_v32 = vadd.f32 %v1704_v19, %v1703_v63 }
 0x2d7   : > { %v1813_v26 = vadd.f32 %v3698_v9, %v1812_v22  ;;  %v1806_v39 = vmax.f32 %v1805_v21, 0.0  ;;  %v1842_v22 = vrot.slane %v3649_v57, %v1228_v13 }
 0x2d8   : > { %v1711_v46 = vadd.f32 %v1710_v16, %v1709_v18  ;;  %v1714_v33 = vrot.slane %v1713_v23, 2  ;;  %v1719_v35 = vadd.f32 %v1718_v24, %v1695_v53  ;;  %v1629_v37 = vpop.f32.mrb[36].mxu0 }
 0x2d9   : > { %v1814_v42 = vmax.f32 %v1813_v26, 0.0  ;;  %v1819_v31 = vadd.f32 %v1818_v30, %v1629_v37  ;;  %v1631_v43 = vpop.f32.mrb[37].mxu0 }
 0x2da   : > { %v1757_v38 = vsel %vm1137_vm8, %v1711_v46, %v1705_v32  ;;  %v1715_v47 = vadd.f32 %v1714_v33, %v1713_v23  ;;  %v1720_v45 = vrot.slane %v1719_v35, 2  ;;  %v1696_v49 = vmul.f32 %v1631_v43, %v3490_v2  ;;  %v1633_v36 = vpop.f32.mrb[38].mxu0 }
 0x2db   : > { %v1848_v40 = vpack.c.bf16 %v1814_v42, %v1806_v39  ;;  %v1820_v27 = vadd.f32 %v1819_v31, %v3649_v57  ;;  %v1827_v56 = vadd.f32 %v1826_v41, %v1633_v36  ;;  %v1635_v28 = vpop.f32.mrb[39].mxu0 }
 0x2dc   : > { %v1716_v51 = vrot.slane %v1715_v47, 1  ;;  %v1721_v48 = vadd.f32 %v1720_v45, %v1719_v35  ;;  %v1724_v52 = vrot.slane %v1696_v49, 4  ;;  %v1697_v59 = vmul.f32 %v1635_v28, %v3499_v15 }
 0x2dd   : > { %v1821_v4 = vadd.f32 %v3698_v9, %v1820_v27  ;;  %v1828_v44 = vadd.f32 %v1827_v56, %v3649_v57  ;;  %2960 = vmatmul.mubr.bf16.vlgmr.msra.gmra.mrb[44].mxu0 %v1848_v40 }
 0x2de   : > { %v1717_v60 = vadd.f32 %v1716_v51, %v1715_v47  ;;  %v1722_v61 = vrot.slane %v1721_v48, 1  ;;  %v1725_v63 = vadd.f32 %v1724_v52, %v1696_v49  ;;  %v1730_v3 = vrot.slane %v1697_v59, 4 }
 0x2df   : > { %v1829_v5 = vadd.f32 %v3698_v9, %v1828_v44  ;;  %v1822_v18 = vmax.f32 %v1821_v4, 0.0 }
 0x2e0   : > { %v1758_v10 = vsel %vm1139_vm9, %v1717_v60, %v1757_v38  ;;  %v1723_v12 = vadd.f32 %v1722_v61, %v1721_v48  ;;  %v1726_v6 = vrot.slane %v1725_v63, 2  ;;  %v1731_v14 = vadd.f32 %v1730_v3, %v1697_v59  ;;  %v1639_v19 = vpop.f32.mrb[40].mxu0  ;;  %v3123_v3 = vld [vmem:[%s3938_s12 + $0x60] ss:$8 sps:$4 sm:$0xff]  }
 0x2e1   : > { %v1830_v20 = vmax.f32 %v1829_v5, 0.0  ;;  %v1835_v53 = vadd.f32 %v1834_v8, %v1639_v19  ;;  %v1641_v21 = vpop.f32.mrb[41].mxu0  ;;  %v3128_v5 = vld [vmem:[%s3938_s12 + $0x74] ss:$8 sps:$4 sm:$0xff]   ;;  %v3126_v8 = vld [vmem:[%s3938_s12 + $0x70] ss:$8 sps:$4 sm:$0xff]  }
 0x2e2   : > { %v1759_v16 = vsel %vm1141_vm10, %v1723_v12, %v1758_v10  ;;  %v1727_v23 = vadd.f32 %v1726_v6, %v1725_v63  ;;  %v1732_v24 = vrot.slane %v1731_v14, 2  ;;  %v1698_v1 = vmul.f32 %v1641_v21, %v3509_v25  ;;  %v1643_v26 = vpop.f32.mrb[42].mxu0  ;;  %v3125_v63 = vld [vmem:[%s3938_s12 + $0x64] ss:$8 sps:$4 sm:$0xff]  }
 0x2e3   : > { %v1836_v30 = vadd.f32 %v1835_v53, %v3649_v57  ;;  %v1843_v32 = vadd.f32 %v1842_v22, %v1643_v26  ;;  %v1645_v46 = vpop.f32.mrb[43].mxu0  ;;  %v1849_v33 = vpack.c.bf16 %v1830_v20, %v1822_v18  ;;  %1959 = vmatprep.subr.bf16.mxu1 %v3125_v63 }
 0x2e4   : > { %v1728_v35 = vrot.slane %v1727_v23, 1  ;;  %v1733_v37 = vadd.f32 %v1732_v24, %v1731_v14  ;;  %v1736_v39 = vrot.slane %v1698_v1, 4  ;;  %v1699_v42 = vmul.f32 %v1645_v46, %v3513_v34  ;;  %1960 = vmatpush1.bf16.msra.mxu1 %v3123_v3  ;;  %v2788_v14 = vld [vmem:[%s3936_s10] ss:$0 sm:$0xff] }
 0x2e5   : > { %v1837_v54 = vadd.f32 %v3698_v9, %v1836_v30  ;;  %v1844_v13 = vadd.f32 %v1843_v32, %v3649_v57  ;;  %2963 = vmatprep.mubr.bf16.mxu0 %v1849_v33  ;;  %1961 = vmatprep.subr.bf16.mxu1 %v3128_v5 }
 0x2e6   : > { %v1729_v31 = vadd.f32 %v1728_v35, %v1727_v23  ;;  %v1734_v43 = vrot.slane %v1733_v37, 1  ;;  %v1737_v41 = vadd.f32 %v1736_v39, %v1698_v1  ;;  %v1742_v38 = vrot.slane %v1699_v42, 4 }
 0x2e7   : > { %v1845_v47 = vadd.f32 %v3698_v9, %v1844_v13  ;;  %v1838_v27 = vmax.f32 %v1837_v54, 0.0 }
 0x2e8   : > { %v1735_v45 = vadd.f32 %v1734_v43, %v1733_v37  ;;  %v1738_v49 = vrot.slane %v1737_v41, 2  ;;  %v1743_v36 = vadd.f32 %v1742_v38, %v1699_v42  ;;  %v1760_v40 = vsel %vm1143_vm11, %v1729_v31, %v1759_v16  ;;  %1962 = vmatpush1.bf16.msra.mxu1 %v3126_v8 }
 0x2e9   : > { %v1846_v56 = vmax.f32 %v1845_v47, 0.0  ;;  %2967 = vmatprep.subr.bf16.mxu1 %v3180_v11 }
 0x2ea   : > { %v1739_v28 = vadd.f32 %v1738_v49, %v1737_v41  ;;  %v1744_v51 = vrot.slane %v1743_v36, 2  ;;  %v1761_v48 = vsel %vm1145_vm12, %v1735_v45, %v1760_v40 }
 0x2eb   : > { %v1850_v52 = vpack.c.bf16 %v1846_v56, %v1838_v27 }
 0x2ec   : > { %v1740_v57 = vrot.slane %v1739_v28, 1  ;;  %v1745_v59 = vadd.f32 %v1744_v51, %v1743_v36 }
 0x2ed   : > { %2964 = vmatmul.mubr.bf16.gmra.mrb[48].mxu0 %v1850_v52 }
 0x2ee   : > { %v1741_v4 = vadd.f32 %v1740_v57, %v1739_v28  ;;  %v1746_v44 = vrot.slane %v1745_v59, 1  ;;  %2989 = vmatprep.mubr.msk.bf16.mxu0 %vm3181_vm3, %v3180_v11 }
 0x2f0   : > { %v1747_v9 = vadd.f32 %v1746_v44, %v1745_v59  ;;  %v1762_v60 = vsel %vm1147_vm13, %v1741_v4, %v1761_v48 }
 0x2f2   : > { %v1763_v61 = vsel %vm1149_vm14, %v1747_v9, %v1762_v60 }
 0x383   : > { %v1686_v10 = vpop.f32.mrb[8].mxu1 }
 0x384   : > { %v1748_v12 = vadd.f32 %v1686_v10, %v3647_v55  ;;  %v2941_v6 = vpop.f32.mrb[9].mxu1 }
 0x385   : > { %v1689_v19 = vpop.f32.mrb[10].mxu1 }
 0x386   : > { %v1765_v18 = vadd.f32 %v1763_v61, %v1748_v12  ;;  %v2942_v20 = vpop.f32.mrb[11].mxu1 }
 0x388   : > { %v1773_v53 = vadd.f32 %v2788_v14, %v1765_v18 }
 0x38a   : > { %v1774_v21 = vmax.f32 %v1773_v53, 0.0 }
 0x38c   : > { %v1775_v22 = vpack.c.bf16 %v1774_v21, %v1774_v21 }
 0x38e   : > { %1980 = vmatmul.mubr.bf16.vlgmr.msra.gmra.mrb[12].mxu1 %v1775_v22 }
 0x38f   : > { %2969 = vmatprep.mubr.msk.bf16.mxu1 %vm3181_vm3, %v3180_v11 }
 0x3b0   : > { %v2961_v16 = vpop.f32.mrb[44].mxu0 }
 0x3b1   : > { %v2163_v23 = vmul.f32 %v2961_v16, %v3471_v29  ;;  %v2086_v24 = vpop.f32.mrb[45].mxu0 }
 0x3b2   : > { %v2161_v55 = vmul.f32 %v2086_v24, %v3434_v0  ;;  %v2962_v1 = vpop.f32.mrb[46].mxu0 }
 0x3b3   : > { %v2181_v26 = vrot.slane %v2163_v23, 4  ;;  %v2164_v30 = vmul.f32 %v2962_v1, %v3483_v50  ;;  %v2089_v32 = vpop.f32.mrb[47].mxu0 }
 0x3b4   : > { %v2169_v46 = vrot.slane %v2161_v55, 4  ;;  %v2162_v33 = vmul.f32 %v2089_v32, %v3455_v17 }
 0x3b5   : > { %v2182_v35 = vadd.f32 %v2181_v26, %v2163_v23  ;;  %v2187_v37 = vrot.slane %v2164_v30, 4 }
 0x3b6   : > { %v2170_v39 = vadd.f32 %v2169_v46, %v2161_v55  ;;  %v2175_v42 = vrot.slane %v2162_v33, 4 }
 0x3b7   : > { %v2183_v54 = vrot.slane %v2182_v35, 2  ;;  %v2188_v13 = vadd.f32 %v2187_v37, %v2164_v30 }
 0x3b8   : > { %v2171_v31 = vrot.slane %v2170_v39, 2  ;;  %v2176_v43 = vadd.f32 %v2175_v42, %v2162_v33 }
 0x3b9   : > { %v2184_v29 = vadd.f32 %v2183_v54, %v2182_v35  ;;  %v2189_v41 = vrot.slane %v2188_v13, 2 }
 0x3ba   : > { %v2172_v38 = vadd.f32 %v2171_v31, %v2170_v39  ;;  %v2177_v0 = vrot.slane %v2176_v43, 2 }
 0x3bb   : > { %v2190_v47 = vadd.f32 %v2189_v41, %v2188_v13  ;;  %v2185_v50 = vrot.slane %v2184_v29, 1  ;;  %v3131_v13 = vld [vmem:[%s3941_s15 + $0x4] ss:$8 sps:$4 sm:$0xff]   ;;  %v3134_v41 = vld [vmem:[%s3941_s15 + $0x14] ss:$8 sps:$4 sm:$0xff]  }
 0x3bc   : > { %v2173_v45 = vrot.slane %v2172_v38, 1  ;;  %v2178_v49 = vadd.f32 %v2177_v0, %v2176_v43  ;;  %v3132_v0 = vld [vmem:[%s3941_s15 + $0x10] ss:$8 sps:$4 sm:$0xff]  }
 0x3bd   : > { %v2191_v36 = vrot.slane %v2190_v47, 1  ;;  %v2186_v28 = vadd.f32 %v2185_v50, %v2184_v29  ;;  %v3129_v29 = vld [vmem:[%s3941_s15] ss:$8 sps:$4 sm:$0xff]   ;;  %v3143_v50 = vld [vmem:[%s3941_s15 + $0x44] ss:$8 sps:$4 sm:$0xff]  }
 0x3be   : > { %v2179_v40 = vrot.slane %v2178_v49, 1  ;;  %v2174_v27 = vadd.f32 %v2173_v45, %v2172_v38  ;;  %v3169_v38 = vld [vmem:[%s3404_s29] sm:$0xf]  ;;  %s2854_s29 = sshll.u32 %s3970_s25, 4 }
 0x3bf   : > { %v2192_v52 = vadd.f32 %v2191_v36, %v2190_v47  ;;  %v3137_v47 = vld [vmem:[%s3941_s15 + $0x24] ss:$8 sps:$4 sm:$0xff]   ;;  %v3135_v45 = vld [vmem:[%s3941_s15 + $0x20] ss:$8 sps:$4 sm:$0xff]   ;;  %s710_s30 = scalar_lea.vmem %s3967_s4, %s2854_s29 }
 0x3c0   : > { %v2180_v17 = vadd.f32 %v2179_v40, %v2178_v49  ;;  %v2965_v56 = vpop.f32.mrb[48].mxu0  ;;  %v3140_v49 = vld [vmem:[%s3941_s15 + $0x34] ss:$8 sps:$4 sm:$0xff]   ;;  %v3141_v36 = vld [vmem:[%s3941_s15 + $0x40] ss:$8 sps:$4 sm:$0xff]  }
 0x3c1   : > { %v2167_v51 = vmul.f32 %v2965_v56, %v3509_v25  ;;  %v2102_v48 = vpop.f32.mrb[49].mxu0  ;;  %v3146_v40 = vld [vmem:[%s3941_s15 + $0x54] ss:$8 sps:$4 sm:$0xff]   ;;  %v3147_v56 = vld [vmem:[%s3941_s15 + $0x60] ss:$8 sps:$4 sm:$0xff]  }
 0x3c2   : > { %v2226_v57 = vsel %vm1137_vm8, %v2180_v17, %v2174_v27  ;;  %v2165_v59 = vmul.f32 %v2102_v48, %v3490_v2  ;;  %v2966_v4 = vpop.f32.mrb[50].mxu0  ;;  %v3144_v27 = vld [vmem:[%s3941_s15 + $0x50] ss:$8 sps:$4 sm:$0xff]   ;;  %v3149_v17 = vld [vmem:[%s3941_s15 + $0x64] ss:$8 sps:$4 sm:$0xff]  }
 0x3c3   : > { %v2227_v44 = vsel %vm1139_vm9, %v2186_v28, %v2226_v57  ;;  %v2205_v9 = vrot.slane %v2167_v51, 4  ;;  %v2168_v60 = vmul.f32 %v2966_v4, %v3513_v34  ;;  %v2105_v61 = vpop.f32.mrb[51].mxu0  ;;  %v3152_v28 = vld [vmem:[%s3941_s15 + $0x74] ss:$8 sps:$4 sm:$0xff]   ;;  %v3153_v48 = vld [vmem:[%s3943_s17] sm:$0xff]  }
 0x3c4   : > { %v2193_v63 = vrot.slane %v2165_v59, 4  ;;  %v2166_v3 = vmul.f32 %v2105_v61, %v3499_v15  ;;  %v2228_v5 = vsel %vm1141_vm10, %v2192_v52, %v2227_v44  ;;  %2974 = vmatpush3.bf16.msra.mxu0 %v3153_v48  ;;  %v3155_v52 = vld [vmem:[%s3943_s17 + $0x8] sm:$0xff]   ;;  %v3157_v57 = vld [vmem:[%s3943_s17 + $0x10] sm:$0xff]   ;;  %v3161_v4 = vld [vmem:[%s3943_s17 + $0x20] sm:$0xff]  }
 0x3c5   : > { %v2206_v8 = vadd.f32 %v2205_v9, %v2167_v51  ;;  %v2211_v25 = vrot.slane %v2168_v60, 4  ;;  %v3150_v51 = vld [vmem:[%s3941_s15 + $0x70] ss:$8 sps:$4 sm:$0xff]   ;;  %2975 = vmatprep.subr.bf16.mxu0 %v3180_v11  ;;  %v3163_v44 = vld [vmem:[%s3943_s17 + $0x28] sm:$0xff]  }
 0x3c6   : > { %v2194_v10 = vadd.f32 %v2193_v63, %v2165_v59  ;;  %v2199_v12 = vrot.slane %v2166_v3, 4  ;;  %v3159_v59 = vld [vmem:[%s3943_s17 + $0x18] sm:$0xff]   ;;  %v2815_v63 = vld [vmem:[%s3940_s14] ss:$0 sm:$0xff] }
 0x3c7   : > { %v2207_v6 = vrot.slane %v2206_v8, 2  ;;  %v2212_v14 = vadd.f32 %v2211_v25, %v2168_v60 }
 0x3c8   : > { %v2195_v19 = vrot.slane %v2194_v10, 2  ;;  %v2200_v2 = vadd.f32 %v2199_v12, %v2166_v3  ;;  %2976 = vmatpush3.bf16.msra.mxu0 %v3155_v52  ;;  %v3154_v12 = vld [vmem:[%s3945_s19] sm:$0xff]  }
 0x3c9   : > { %v2208_v18 = vadd.f32 %v2207_v6, %v2206_v8  ;;  %v2213_v20 = vrot.slane %v2212_v14, 2  ;;  %2977 = vmatprep.subr.bf16.mxu0 %v3180_v11 }
 0x3ca   : > { %v2196_v53 = vadd.f32 %v2195_v19, %v2194_v10  ;;  %v2201_v21 = vrot.slane %v2200_v2, 2  ;;  %v3158_v19 = vld [vmem:[%s3945_s19 + $0x10] sm:$0xff]  }
 0x3cb   : > { %v2214_v22 = vadd.f32 %v2213_v20, %v2212_v14  ;;  %v2209_v23 = vrot.slane %v2208_v18, 1  ;;  %v3156_v14 = vld [vmem:[%s3945_s19 + $0x8] sm:$0xff]  }
 0x3cc   : > { %v2197_v34 = vrot.slane %v2196_v53, 1  ;;  %v2202_v16 = vadd.f32 %v2201_v21, %v2200_v2  ;;  %2978 = vmatpush3.bf16.msra.mxu0 %v3157_v57  ;;  %v3160_v2 = vld [vmem:[%s3945_s19 + $0x18] sm:$0xff]   ;;  %v3164_v20 = vld [vmem:[%s3945_s19 + $0x28] sm:$0xff]   ;;  %v3166_v21 = vld [vmem:[%s3945_s19 + $0x30] sm:$0xff]  }
 0x3cd   : > { %v2215_v15 = vrot.slane %v2214_v22, 1  ;;  %v2210_v30 = vadd.f32 %v2209_v23, %v2208_v18  ;;  %2979 = vmatprep.subr.bf16.mxu0 %v3180_v11  ;;  %v3162_v18 = vld [vmem:[%s3945_s19 + $0x20] sm:$0xff]  }
 0x3ce   : > { %v2198_v24 = vadd.f32 %v2197_v34, %v2196_v53  ;;  %v2203_v55 = vrot.slane %v2202_v16, 1  ;;  %v3165_v53 = vld [vmem:[%s3943_s17 + $0x30] sm:$0xff]   ;;  %v3168_v34 = vld [vmem:[%s3945_s19 + $0x38] sm:$0xff]  }
 0x3cf   : > { %v2216_v32 = vadd.f32 %v2215_v15, %v2214_v22  ;;  %v3167_v22 = vld [vmem:[%s3943_s17 + $0x38] sm:$0xff]  }
 0x3d0   : > { %v2204_v1 = vadd.f32 %v2203_v55, %v2202_v16  ;;  %v2229_v26 = vsel %vm1143_vm11, %v2198_v24, %v2228_v5  ;;  %2980 = vmatpush3.bf16.msra.mxu0 %v3159_v59  ;;  %v2261_v16 = vld [vmem:[%s3942_s16] sm:$0x3] }
 0x3d1   : > { %2981 = vmatprep.subr.bf16.mxu0 %v3180_v11  ;;  %v2266_v23 = vrot.slane %v2261_v16, %v3421_v58  ;;  %v2270_v24 = vrot.slane %v2261_v16, %v3428_v62  ;;  %v2841_v58 = vld [vmem:[%s3966_s27] ss:$0 sm:$0xff] }
 0x3d2   : > { %v2230_v46 = vsel %vm1145_vm12, %v2204_v1, %v2229_v26 }
 0x3d3   : > { %v2231_v33 = vsel %vm1147_vm13, %v2210_v30, %v2230_v46 }
 0x3d4   : > { %v3785_v35 = vsel %vm1149_vm14, %v2216_v32, %v2231_v33  ;;  %2982 = vmatpush3.bf16.msra.mxu0 %v3161_v4 }
 0x3d5   : > { %2983 = vmatprep.subr.bf16.mxu0 %v3180_v11 }
 0x3d8   : > { %2984 = vmatpush3.bf16.msra.mxu0 %v3163_v44 }
 0x3d9   : > { %2985 = vmatprep.subr.bf16.mxu0 %v3180_v11 }
 0x3dc   : > { %2986 = vmatpush3.bf16.msra.mxu0 %v3165_v53 }
 0x3dd   : > { %2987 = vmatprep.subr.bf16.mxu0 %v3180_v11 }
 0x3e0   : > { %2988 = vmatpush3.bf16.msra.mxu0 %v3167_v22 }
 0x461   : > { %v1981_v37 = vpop.f32.mrb[12].mxu1 }
 0x462   : > { %v1983_v39 = vpop.f32.mrb[13].mxu1 }
 0x463   : > { %v2117_v42 = vpack.c.bf16 %v1983_v39, %v1983_v39  ;;  %v1985_v54 = vpop.f32.mrb[14].mxu1 }
 0x464   : > { %v1986_v31 = vpop.f32.mrb[15].mxu1 }
 0x465   : > { %v2119_v43 = vsel %vm765_vm1, %v2117_v42, 0 }
 0x466   : > { %2968 = vmatpush3.bf16.msra.mxu1 %v2119_v43 }
 0x467   : > { %2353 = vmatprep.subr.bf16.mxu1 %v3131_v13 }
 0x469   : > { %2970 = vmatmul.mubr.msk.bf16.vlgmr.msra.gmra.mrb[16].mxu1 %vm985_vm7, %v3169_v38 }
 0x46a   : > { %2354 = vmatpush1.bf16.msra.mxu1 %v3129_v29  ;;  %2385 = vmatprep.mubr.bf16.mxu1 %v3179_v7  ;;  %v3138_v7 = vld [vmem:[%s3941_s15 + $0x30] ss:$8 sps:$4 sm:$0xff]  }
 0x46b   : > { %2355 = vmatprep.subr.bf16.mxu1 %v3134_v41 }
 0x46e   : > { %2356 = vmatpush1.bf16.msra.mxu1 %v3132_v0 }
 0x46f   : > { %2357 = vmatprep.subr.bf16.mxu1 %v3137_v47 }
 0x472   : > { %2358 = vmatpush1.bf16.msra.mxu1 %v3135_v45 }
 0x473   : > { %2359 = vmatprep.subr.bf16.mxu1 %v3140_v49 }
 0x476   : > { %2360 = vmatpush1.bf16.msra.mxu1 %v3138_v7 }
 0x477   : > { %2361 = vmatprep.subr.bf16.mxu1 %v3143_v50 }
 0x47a   : > { %2362 = vmatpush1.bf16.msra.mxu1 %v3141_v36 }
 0x47b   : > { %2363 = vmatprep.subr.bf16.mxu1 %v3146_v40 }
 0x47e   : > { %2364 = vmatpush1.bf16.msra.mxu1 %v3144_v27 }
 0x47f   : > { %2365 = vmatprep.subr.bf16.mxu1 %v3149_v17 }
 0x482   : > { %2366 = vmatpush1.bf16.msra.mxu1 %v3147_v56 }
 0x483   : > { %2367 = vmatprep.subr.bf16.mxu1 %v3152_v28 }
 0x486   : > { %2368 = vmatpush1.bf16.msra.mxu1 %v3150_v51 }
 0x487   : > { %2993 = vmatprep.subr.bf16.mxu1 %v3180_v11 }
 0x53c   : > { %v2155_v9 = vpop.f32.mrb[16].mxu1 }
 0x53d   : > { %v2217_v60 = vadd.f32 %v2155_v9, %v1981_v37  ;;  %v2971_v61 = vpop.f32.mrb[17].mxu1  ;;  %v2832_v37 = vld [vmem:[%s3944_s18] ss:$0 sm:$0xff] }
 0x53e   : > { %v2158_v3 = vpop.f32.mrb[18].mxu1 }
 0x53f   : > { %v2234_v5 = vadd.f32 %v3785_v35, %v2217_v60  ;;  %v2972_v8 = vpop.f32.mrb[19].mxu1 }
 0x541   : > { %v2242_v25 = vadd.f32 %v2815_v63, %v2234_v5 }
 0x543   : > { %v2243_v10 = vmax.f32 %v2242_v25, 0.0 }
 0x545   : > { %v2244_v6 = vpack.c.bf16 %v2243_v10, %v2243_v10 }
 0x547   : > { %2386 = vmatmul.mubr.bf16.vlgmr.msra.gmra.mrb[20].mxu1 %v2244_v6 }
 0x548   : > { %2994 = vmatpush3.bf16.msra.mxu1 %v3154_v12  ;;  %3009 = vmatprep.mubr.msk.bf16.mxu1 %vm3181_vm3, %v3180_v11 }
 0x549   : > { %2995 = vmatprep.subr.bf16.mxu1 %v3180_v11 }
 0x54c   : > { %2996 = vmatpush3.bf16.msra.mxu1 %v3156_v14 }
 0x54d   : > { %2997 = vmatprep.subr.bf16.mxu1 %v3180_v11 }
 0x550   : > { %2998 = vmatpush3.bf16.msra.mxu1 %v3158_v19 }
 0x551   : > { %2999 = vmatprep.subr.bf16.mxu1 %v3180_v11 }
 0x554   : > { %3000 = vmatpush3.bf16.msra.mxu1 %v3160_v2 }
 0x555   : > { %3001 = vmatprep.subr.bf16.mxu1 %v3180_v11 }
 0x558   : > { %3002 = vmatpush3.bf16.msra.mxu1 %v3162_v18 }
 0x559   : > { %3003 = vmatprep.subr.bf16.mxu1 %v3180_v11 }
 0x55c   : > { %3004 = vmatpush3.bf16.msra.mxu1 %v3164_v20 }
 0x55d   : > { %3005 = vmatprep.subr.bf16.mxu1 %v3180_v11 }
 0x560   : > { %3006 = vmatpush3.bf16.msra.mxu1 %v3166_v21 }
 0x561   : > { %3007 = vmatprep.subr.bf16.mxu1 %v3180_v11 }
 0x564   : > { %3008 = vmatpush3.bf16.msra.mxu1 %v3168_v34 }
 0x61a   : > { %v2387_v15 = vpop.f32.mrb[20].mxu1 }
 0x61b   : > { %v2388_v55 = vadd.f32 %v2387_v15, %v2266_v23  ;;  %v2389_v1 = vpop.f32.mrb[21].mxu1 }
 0x61c   : > { %v2390_v26 = vadd.f32 %v2389_v1, %v2270_v24  ;;  %v2391_v11 = vpop.f32.mrb[22].mxu1 }
 0x61d   : > { %v2394_v30 = vmax.f32 %v2388_v55, 0.0  ;;  %v2392_v32 = vpop.f32.mrb[23].mxu1 }
 0x61e   : > { %v2395_v46 = vmax.f32 %v2390_v26, 0.0 }
 0x61f   : > { %v2396_v33 = vpack.c.bf16 %v2394_v30, %v2394_v30 }
 0x620   : > { %v2397_v35 = vpack.c.bf16 %v2395_v46, %v2395_v46 }
 0x621   : > { %2990 = vmatmul.mubr.bf16.vlgmr.msra.gmra.mrb[52].mxu0 %v2396_v33 }
 0x622   : > { %3010 = vmatmul.mubr.bf16.vlgmr.msra.gmra.mrb[24].mxu1 %v2397_v35 }
 0x6f4   : > { %v2503_v62 = vpop.f32.mrb[52].mxu0 }
 0x6f5   : > { %v2504_v39 = vadd.f32 %v2832_v37, %v2503_v62  ;;  %v2991_v42 = vpop.f32.mrb[53].mxu0  ;;  %v2614_v54 = vpop.f32.mrb[24].mxu1 }
 0x6f6   : > { %v2615_v13 = vadd.f32 %v2841_v58, %v2614_v54  ;;  %v2506_v31 = vpop.f32.mrb[54].mxu0  ;;  %v3011_v43 = vpop.f32.mrb[25].mxu1 }
 0x6f7   : > { %2620 = vst [vmem:[%s710_s30] sm:$0xff] %v2504_v39  ;;  %v2992_v29 = vpop.f32.mrb[55].mxu0  ;;  %v2617_v41 = vpop.f32.mrb[26].mxu1 }
 0x6f8   : > { %2621 = vst [vmem:[%s710_s30 + $0x8] sm:$0xff] %v2615_v13  ;;  %v3012_v38 = vpop.f32.mrb[27].mxu1 }
 0x6f9 PF: > { %s3968_s25 = sld [smem:[#allocation2_spill]] }
 0x6ff   : > { %s31_s2 = sadd.s32 1, %s3968_s25  }
 0x700   : > { %p28_p4 = scmp.ge.s32.totalorder %s31_s2, 4  }
 0x702   :  { %30 = sbr.rel (!%p28_p4) target bundleno = 9 (0x9), region = 143 }

</bundles_post_ra>
